<compile_context>
chip_gen: v7x
topology: tpu7x:2x2x1
jax: 0.10.0
libtpu: 0.0.40
codegen_flags: <defaults>
</compile_context>

<pallas_src>
import functools

import jax
import jax.numpy as jnp
from jax.experimental import pallas as pl
from jax.experimental.pallas import tpu as pltpu


def _lstm_core_kernel(xt_ref, h_ref, c_ref, w_ref, b_ref,
                      out_h_ref, out_c_ref, *, lstm_size: int):
    """Single-step LSTM cell, one batch tile per grid step.

    Shapes (per grid step, all resident in VMEM):
      xt_ref : (block_b, E)       f32
      h_ref  : (block_b, H)       f32   previous hidden
      c_ref  : (block_b, H)       f32   previous cell
      w_ref  : (E + H, 4H)        f32/bf16   fused [Wi ; Wh] (pre-transposed)
      b_ref  : (1, 4H)            f32        fused bi + bh
      out_h_ref, out_c_ref : (block_b, H) f32
    """
    H = lstm_size
    x = xt_ref[...]
    h = h_ref[...]
    c = c_ref[...]
    w = w_ref[...]

    # Single fused MXU matmul: [x | h] @ [Wi ; Wh]  (contraction K = E + H).
    # Cast operands to the weight dtype (no-op for f32, bf16 MXU path for bf16
    # weights); accumulate in f32 regardless.
    z = jnp.concatenate([x, h], axis=-1).astype(w.dtype)
    sums = jnp.dot(z, w, preferred_element_type=jnp.float32) + b_ref[...]

    # sigmoid over first 3H, tanh over last H (EUP transcendentals, f32).
    # With H a multiple of 128 these slices are full lane-aligned blocks.
    in_gate = jax.nn.sigmoid(sums[:, 0 * H:1 * H])
    forget_gate = jax.nn.sigmoid(sums[:, 1 * H:2 * H])
    out_gate = jax.nn.sigmoid(sums[:, 2 * H:3 * H])
    in_transform = jnp.tanh(sums[:, 3 * H:4 * H])

    next_c = forget_gate * c + in_gate * in_transform
    next_h = out_gate * jnp.tanh(next_c)   # dropout == identity (eval mode)

    out_h_ref[...] = next_h
    out_c_ref[...] = next_c


def pack_params(params, *, lstm_size: int, param_dtype=jnp.float32):
    """One-time parameter packing (outside the per-step hot path).

    params: dict with 'wi' (E,4H), 'bi' (4H,), 'wh' (H,4H), 'bh' (4H,)
            (weights pre-transposed vs. nn.Linear).
    Returns {'w': (E+H, 4H) param_dtype, 'b': (1, 4H) f32}.
    Use param_dtype=jnp.bfloat16 on v6e/v7x to halve weight traffic; the
    kernel keeps accumulation and elementwise math in f32.
    """
    H = lstm_size
    w = jnp.concatenate([params["wi"], params["wh"]], axis=0).astype(param_dtype)
    b = (params["bi"] + params["bh"]).reshape(1, 4 * H).astype(jnp.float32)
    return {"w": w, "b": b}


def lstm_core_forward(xt, state, packed, *, lstm_size: int, block_b=None):
    """Mirrors LSTMCore.forward (eval mode).

    xt     : (B, E) float32
    state  : tuple (h, c), each (num_layers, B, H); the last layer is used.
    packed : output of pack_params().
    returns (output, (next_h[None], next_c[None]))
    """
    pre_h = state[0][-1]   # (B, H)
    pre_c = state[1][-1]   # (B, H)

    B, E = xt.shape
    H = lstm_size

    if block_b is None:
        # One batch tile for small B; 128-row tiles otherwise (a grid axis
        # marked "parallel" lets v7x shard batch tiles across its 2 TCs).
        block_b = B if B <= 128 else 128
    assert B % block_b == 0, "batch must be divisible by block_b"
    grid = (B // block_b,)

    kernel = functools.partial(_lstm_core_kernel, lstm_size=H)

    next_h, next_c = pl.pallas_call(
        kernel,
        out_shape=(
            jax.ShapeDtypeStruct((B, H), jnp.float32),
            jax.ShapeDtypeStruct((B, H), jnp.float32),
        ),
        grid=grid,
        in_specs=[
            pl.BlockSpec((block_b, E), lambda i: (i, 0)),        # xt tile
            pl.BlockSpec((block_b, H), lambda i: (i, 0)),        # pre_h tile
            pl.BlockSpec((block_b, H), lambda i: (i, 0)),        # pre_c tile
            pl.BlockSpec((E + H, 4 * H), lambda i: (0, 0)),      # fused W (resident)
            pl.BlockSpec((1, 4 * H), lambda i: (0, 0)),          # fused bias (resident)
        ],
        out_specs=(
            pl.BlockSpec((block_b, H), lambda i: (i, 0)),
            pl.BlockSpec((block_b, H), lambda i: (i, 0)),
        ),
        # pre_h -> next_h, pre_c -> next_c: lets a donating caller update
        # state in place with no extra HBM allocation per step.
        input_output_aliases={1: 0, 2: 1},
        compiler_params=pltpu.CompilerParams(
            dimension_semantics=("parallel",),
        ),
    )(xt, pre_h, pre_c, packed["w"], packed["b"])

    output = next_h
    new_state = (next_h[None, ...], next_c[None, ...])
    return output, new_state


def _reference_forward(xt, state, params, *, lstm_size: int):
    """Pure-JAX reference reproducing the PyTorch math (for correctness check)."""
    H = lstm_size
    pre_h = state[0][-1]
    pre_c = state[1][-1]
    hi = jax.lax.Precision.HIGHEST
    sums = (jnp.dot(xt, params["wi"], precision=hi) + params["bi"]
            + jnp.dot(pre_h, params["wh"], precision=hi) + params["bh"])
    i = jax.nn.sigmoid(sums[:, 0 * H:1 * H])
    f = jax.nn.sigmoid(sums[:, 1 * H:2 * H])
    o = jax.nn.sigmoid(sums[:, 2 * H:3 * H])
    g = jnp.tanh(sums[:, 3 * H:4 * H])
    next_c = f * pre_c + i * g
    next_h = o * jnp.tanh(next_c)
    return next_h, (next_h[None], next_c[None])


if __name__ == "__main__":
    # Small but TPU-friendly shapes: H and E multiples of 128 keep gate slices
    # and output stores lane-dense; B=128 fills the MXU rows.
    batch = 128
    input_encoding_size = 128   # E
    lstm_size = 128             # H
    initrange = 0.1

    key = jax.random.PRNGKey(0)
    k_wi, k_bi, k_wh, k_bh, k_x, k_h, k_c = jax.random.split(key, 7)

    # Deterministic parameter init: uniform(-0.1, 0.1), matching __init__.
    # Stored transposed relative to nn.Linear's (4H, in) layout.
    params = {
        "wi": jax.random.uniform(k_wi, (input_encoding_size, 4 * lstm_size),
                                 jnp.float32, -initrange, initrange),
        "bi": jax.random.uniform(k_bi, (4 * lstm_size,), jnp.float32,
                                 -initrange, initrange),
        "wh": jax.random.uniform(k_wh, (lstm_size, 4 * lstm_size),
                                 jnp.float32, -initrange, initrange),
        "bh": jax.random.uniform(k_bh, (4 * lstm_size,), jnp.float32,
                                 -initrange, initrange),
    }
    packed = pack_params(params, lstm_size=lstm_size)   # one-time fusion

    xt = jax.random.normal(k_x, (batch, input_encoding_size), jnp.float32)
    h0 = jax.random.normal(k_h, (1, batch, lstm_size), jnp.float32)
    c0 = jax.random.normal(k_c, (1, batch, lstm_size), jnp.float32)
    state = (h0, c0)

    # Reference computed first (pure-JAX), then the Pallas kernel.
    ref_out, ref_state = _reference_forward(xt, state, params, lstm_size=lstm_size)
    ref_out = jax.block_until_ready(ref_out)

    output, new_state = lstm_core_forward(xt, state, packed, lstm_size=lstm_size)
    output = jax.block_until_ready(output)
    new_state = jax.tree_util.tree_map(jax.block_until_ready, new_state)

    assert output.shape == (batch, lstm_size)
    assert new_state[0].shape == (1, batch, lstm_size)
    assert new_state[1].shape == (1, batch, lstm_size)
    assert jnp.allclose(output, ref_out, atol=1e-4, rtol=1e-4)
    assert jnp.allclose(new_state[0], ref_state[0], atol=1e-4, rtol=1e-4)
    assert jnp.allclose(new_state[1], ref_state[1], atol=1e-4, rtol=1e-4)

    print("KERNEL_OK")
</pallas_src>

<mosaic_0001>
module attributes {stable_mosaic.version = 11 : i64} {
  func.func @_lstm_core_kernel(%arg0: i32, %arg1: memref<128x128xf32, #tpu.memory_space<vmem>>, %arg2: memref<128x128xf32, #tpu.memory_space<vmem>>, %arg3: memref<128x128xf32, #tpu.memory_space<vmem>>, %arg4: memref<256x512xf32, #tpu.memory_space<vmem>>, %arg5: memref<1x512xf32, #tpu.memory_space<vmem>>, %arg6: memref<128x128xf32, #tpu.memory_space<vmem>>, %arg7: memref<128x128xf32, #tpu.memory_space<vmem>>) attributes {dimension_semantics = [#tpu.dimension_semantics<parallel>], iteration_bounds = array<i64: 1>, scalar_prefetch = 0 : i64, scratch_operands = 0 : i64, tpu.core_type = #tpu.core_type<tc>, window_params = [{transform_indices = @transform_0, window_bounds = array<i64: 128, 128>}, {transform_indices = @transform_1, window_bounds = array<i64: 128, 128>}, {transform_indices = @transform_2, window_bounds = array<i64: 128, 128>}, {pipeline_mode = #tpu.pipeline_mode<synchronous>, transform_indices = @transform_3, window_bounds = array<i64: 256, 512>}, {pipeline_mode = #tpu.pipeline_mode<synchronous>, transform_indices = @transform_4, window_bounds = array<i64: 1, 512>}, {transform_indices = @transform_5, window_bounds = array<i64: 128, 128>}, {transform_indices = @transform_6, window_bounds = array<i64: 128, 128>}]} {
    %c0 = arith.constant 0 : index
    %c0_0 = arith.constant 0 : index
    %0 = vector.load %arg1[%c0, %c0_0] : memref<128x128xf32, #tpu.memory_space<vmem>>, vector<128x128xf32>
    %c0_1 = arith.constant 0 : index
    %c0_2 = arith.constant 0 : index
    %1 = vector.load %arg2[%c0_1, %c0_2] : memref<128x128xf32, #tpu.memory_space<vmem>>, vector<128x128xf32>
    %c0_3 = arith.constant 0 : index
    %c0_4 = arith.constant 0 : index
    %2 = vector.load %arg3[%c0_3, %c0_4] : memref<128x128xf32, #tpu.memory_space<vmem>>, vector<128x128xf32>
    %c0_5 = arith.constant 0 : index
    %c0_6 = arith.constant 0 : index
    %3 = vector.load %arg4[%c0_5, %c0_6] : memref<256x512xf32, #tpu.memory_space<vmem>>, vector<256x512xf32>
    %4 = tpu.concatenate %0, %1 in 1 : vector<128x128xf32>, vector<128x128xf32> -> vector<128x256xf32>
    %cst = arith.constant dense<0.000000e+00> : vector<128x512xf32>
    %5 = tpu.matmul %4, %3, %cst {dimension_numbers = #tpu.dot_dimension_numbers<[1], [0], [0], [1], [0, 0, 1, 1], [], []>} : vector<128x256xf32>, vector<256x512xf32>, vector<128x512xf32> -> vector<128x512xf32>
    %c0_7 = arith.constant 0 : index
    %c0_8 = arith.constant 0 : index
    %6 = vector.load %arg5[%c0_7, %c0_8] : memref<1x512xf32, #tpu.memory_space<vmem>>, vector<1x512xf32>
    %7 = vector.broadcast %6 : vector<1x512xf32> to vector<128x512xf32>
    %8 = arith.addf %5, %7 : vector<128x512xf32>
    %9 = vector.extract_strided_slice %8 {offsets = [0, 0], sizes = [128, 128], strides = [1, 1]} : vector<128x512xf32> to vector<128x128xf32>
    %10 = arith.negf %9 : vector<128x128xf32>
    %11 = math.exp %10 : vector<128x128xf32>
    %cst_9 = arith.constant 1.000000e+00 : f32
    %12 = vector.broadcast %cst_9 : f32 to vector<128x128xf32>
    %13 = arith.addf %12, %11 : vector<128x128xf32>
    %14 = arith.divf %12, %13 : vector<128x128xf32>
    %15 = vector.extract_strided_slice %8 {offsets = [0, 128], sizes = [128, 128], strides = [1, 1]} : vector<128x512xf32> to vector<128x128xf32>
    %16 = arith.negf %15 : vector<128x128xf32>
    %17 = math.exp %16 : vector<128x128xf32>
    %cst_10 = arith.constant 1.000000e+00 : f32
    %18 = vector.broadcast %cst_10 : f32 to vector<128x128xf32>
    %19 = arith.addf %18, %17 : vector<128x128xf32>
    %20 = arith.divf %18, %19 : vector<128x128xf32>
    %21 = vector.extract_strided_slice %8 {offsets = [0, 256], sizes = [128, 128], strides = [1, 1]} : vector<128x512xf32> to vector<128x128xf32>
    %22 = arith.negf %21 : vector<128x128xf32>
    %23 = math.exp %22 : vector<128x128xf32>
    %cst_11 = arith.constant 1.000000e+00 : f32
    %24 = vector.broadcast %cst_11 : f32 to vector<128x128xf32>
    %25 = arith.addf %24, %23 : vector<128x128xf32>
    %26 = arith.divf %24, %25 : vector<128x128xf32>
    %27 = vector.extract_strided_slice %8 {offsets = [0, 384], sizes = [128, 128], strides = [1, 1]} : vector<128x512xf32> to vector<128x128xf32>
    %28 = math.tanh %27 : vector<128x128xf32>
    %29 = arith.mulf %20, %2 : vector<128x128xf32>
    %30 = arith.mulf %14, %28 : vector<128x128xf32>
    %31 = arith.addf %29, %30 : vector<128x128xf32>
    %32 = math.tanh %31 : vector<128x128xf32>
    %33 = arith.mulf %26, %32 : vector<128x128xf32>
    %c0_12 = arith.constant 0 : index
    %c0_13 = arith.constant 0 : index
    %34 = vector.load %arg6[%c0_12, %c0_13] : memref<128x128xf32, #tpu.memory_space<vmem>>, vector<128x128xf32>
    tpu.vector_store %arg6[%c0_12, %c0_13], %33 {strides = array<i32>} : memref<128x128xf32, #tpu.memory_space<vmem>>, vector<128x128xf32>,
    %c0_14 = arith.constant 0 : index
    %c0_15 = arith.constant 0 : index
    %35 = vector.load %arg7[%c0_14, %c0_15] : memref<128x128xf32, #tpu.memory_space<vmem>>, vector<128x128xf32>
    tpu.vector_store %arg7[%c0_14, %c0_15], %31 {strides = array<i32>} : memref<128x128xf32, #tpu.memory_space<vmem>>, vector<128x128xf32>,
    return
  }
  func.func @transform_0(%arg0: i32) -> (i32, i32) {
    %c0_i32 = arith.constant 0 : i32
    %c0_i32_0 = arith.constant 0 : i32
    return %arg0, %c0_i32 : i32, i32
  }
  func.func @transform_1(%arg0: i32) -> (i32, i32) {
    %c0_i32 = arith.constant 0 : i32
    %c0_i32_0 = arith.constant 0 : i32
    return %arg0, %c0_i32 : i32, i32
  }
  func.func @transform_2(%arg0: i32) -> (i32, i32) {
    %c0_i32 = arith.constant 0 : i32
    %c0_i32_0 = arith.constant 0 : i32
    return %arg0, %c0_i32 : i32, i32
  }
  func.func @transform_3(%arg0: i32) -> (i32, i32) {
    %c0_i32 = arith.constant 0 : i32
    %c0_i32_0 = arith.constant 0 : i32
    %c0_i32_1 = arith.constant 0 : i32
    return %c0_i32, %c0_i32_0 : i32, i32
  }
  func.func @transform_4(%arg0: i32) -> (i32, i32) {
    %c0_i32 = arith.constant 0 : i32
    %c0_i32_0 = arith.constant 0 : i32
    %c0_i32_1 = arith.constant 0 : i32
    return %c0_i32, %c0_i32_0 : i32, i32
  }
  func.func @transform_5(%arg0: i32) -> (i32, i32) {
    %c0_i32 = arith.constant 0 : i32
    %c0_i32_0 = arith.constant 0 : i32
    return %arg0, %c0_i32 : i32, i32
  }
  func.func @transform_6(%arg0: i32) -> (i32, i32) {
    %c0_i32 = arith.constant 0 : i32
    %c0_i32_0 = arith.constant 0 : i32
    return %arg0, %c0_i32 : i32, i32
  }
}

</mosaic_0001>

<bundles_post_ra>
// kernel: tpu_custom_call.1
= control target key start
LH: loop header
LB: loop body
LE: loop exit
PB: predicated region body
PF: predicated region fallthrough
CT: control target
= control target key end

     0   :  { %12 = vsyncpa [#allocation3], 0  ;;  %s2002_s0 = inlined_call_operand.vmem [shape: f32[128,128], index: 0, kind: input, shape index: {}]   ;;  %s2003_s1 = inlined_call_operand.hbm [shape: f32[128,128], index: 1, kind: input, shape index: {}, may-alias: {1,5}]   ;;  %s2004_s2 = inlined_call_operand.hbm [shape: f32[128,128], index: 2, kind: input, shape index: {}, may-alias: {2,6}]   ;;  %s2005_s3 = inlined_call_operand.hbm [shape: f32[256,512], index: 3, kind: input, shape index: {}]   ;;  %s2006_s4 = inlined_call_operand.vmem [shape: f32[1,512], index: 4, kind: input, shape index: {}]   ;;  %s2007_s5 = inlined_call_operand.hbm [shape: f32[128,128], index: 5, kind: output, shape index: {0}, may-alias: {1,5}]   ;;  %s2008_s6 = inlined_call_operand.hbm [shape: f32[128,128], index: 6, kind: output, shape index: {1}, may-alias: {2,6}]  }
   0x1   :  { %13 = vsyncpa [#allocation6], 0 }
   0x2   :  { %14 = vsyncpa [#allocation4], 0 }
   0x3   :  { %15 = vsyncpa [#allocation10], 0  ;;  %s1594_s21 = smov [#allocation5]   ;;  %s1595_s23 = smov [#allocation2]  }
   0x4   :  { %s35_s22 = sshll.u32 %s1594_s21, 4  ;;  %s23_s24 = sshll.u32 %s1595_s23, 4  ;;  %s36_s22 = int_to_ptr.vmem [resolvable:$true] %s35_s22  ;;  %s1638_s24 = int_to_ptr.vmem [resolvable:$true] %s23_s24 }
   0x5   :  { %s1476_s27 = scalar_lea.hbm %s2004_s2, 2048 }
   0x6   :  { %p1477_p0 = scmp.ne.s32.totalorder %s2004_s2, %s1476_s27  ;;  %p1480_p1 = scmp.lt.u32.totalorder %s1476_s27, %s2004_s2 }
   0x8   :  { %p1482_p2 = pnand %p1480_p1, %p1477_p0 }
   0xa   :  { %1485 = shalt.err (!%p1482_p2)
}
   0xb   :  { %s1486_s8 = scalar_lea.vmem %s36_s22, 2048  ;;  %p1491_p4 = scmp.lt.s32.totalorder %s36_s22, %s36_s22 }
   0xc   :  { %p1487_p3 = scmp.ne.s32.totalorder %s36_s22, %s1486_s8  ;;  %p1492_p5 = scmp.lt.s32.totalorder %s1486_s8, %s1486_s8 }
   0xe   :  { %p1493_p6 = por %p1492_p5, %p1491_p4 }
  0x10   :  { %p1494_p7 = pnand %p1493_p6, %p1487_p3 }
  0x12   :  { %1497 = shalt.err (!%p1494_p7)
}
  0x13   :  { %s1596_s9 = smov 128   ;;  %s1597_s10 = smov 8  }
  0x14   :  { %41 = dma.hbm_to_vmem [thread:$0]  %s2004_s2, 2048, %s36_s22, [#allocation6], %s1596_s9, %s1596_s9, %s1597_s10  }
  0x15   :  { %s1498_s15 = scalar_lea.hbm %s2003_s1, 2048 }
  0x16   :  { %p1499_p8 = scmp.ne.s32.totalorder %s2003_s1, %s1498_s15  ;;  %p1502_p9 = scmp.lt.u32.totalorder %s1498_s15, %s2003_s1 }
  0x18   :  { %p1504_p10 = pnand %p1502_p9, %p1499_p8 }
  0x1a   :  { %1507 = shalt.err (!%p1504_p10)
}
  0x1b   :  { %s1508_s20 = scalar_lea.vmem %s1638_s24, 2048  ;;  %p1513_p12 = scmp.lt.s32.totalorder %s1638_s24, %s1638_s24 }
  0x1c   :  { %p1509_p11 = scmp.ne.s32.totalorder %s1638_s24, %s1508_s20  ;;  %p1514_p13 = scmp.lt.s32.totalorder %s1508_s20, %s1508_s20 }
  0x1e   :  { %p1515_p0 = por %p1514_p13, %p1513_p12 }
  0x20   :  { %p1516_p1 = pnand %p1515_p0, %p1509_p11 }
  0x22   :  { %1519 = shalt.err (!%p1516_p1)
}
  0x23   :  { %29 = dma.hbm_to_vmem [thread:$0]  %s2003_s1, 2048, %s1638_s24, [#allocation3], %s1596_s9, %s1596_s9, %s1597_s10  }
  0x24   :  { %s1598_s22 = smov [#allocation7]   ;;  %s1520_s27 = scalar_lea.hbm %s2005_s3, 16384 }
  0x25   :  { %s47_s23 = sshll.u32 %s1598_s22, 4  ;;  %p1521_p2 = scmp.ne.s32.totalorder %s2005_s3, %s1520_s27  ;;  %s48_s23 = int_to_ptr.vmem [resolvable:$true] %s47_s23 }
  0x26   :  { %p1524_p3 = scmp.lt.u32.totalorder %s1520_s27, %s2005_s3 }
  0x28   :  { %p1526_p4 = pnand %p1524_p3, %p1521_p2 }
  0x2a   :  { %1529 = shalt.err (!%p1526_p4)
}
  0x2b   :  { %s1530_s8 = scalar_lea.vmem %s48_s23, 16384  ;;  %p1535_p6 = scmp.lt.s32.totalorder %s48_s23, %s48_s23 }
  0x2c   :  { %p1531_p5 = scmp.ne.s32.totalorder %s48_s23, %s1530_s8  ;;  %p1536_p7 = scmp.lt.s32.totalorder %s1530_s8, %s1530_s8 }
  0x2e   :  { %p1537_p8 = por %p1536_p7, %p1535_p6 }
  0x30   :  { %p1538_p9 = pnand %p1537_p8, %p1531_p5 }
  0x32   :  { %1541 = shalt.err (!%p1538_p9)
}
  0x33   :  { %s1599_s1 = smov 512   ;;  %s1600_s24 = smov 32  }
  0x34   :  { %53 = dma.hbm_to_vmem [thread:$0]  %s2005_s3, 16384, %s48_s23, [#allocation6], %s1599_s1, %s1599_s1, %s1600_s24  }
  0x35   :  { %1586 = dma.done.wait [#allocation3], 2048  }
  0x36   :  { %1587 = vsyncadd [#allocation3], 4294965248 }
  0x37   :  { %1588 = dma.done.wait [#allocation6], 18432  }
  0x38   :  { %1589 = vsyncadd [#allocation6], 4294948864  ;;  %v114_v0 = vld [vmem:[#allocation7 + $0x8] sm:$0xff]  ;;  %v113_v2 = vld [vmem:[#allocation7] sm:$0xff] }
  0x39   :  { %v118_v1 = vld [vmem:[#allocation7 + $0x28] sm:$0xff]  ;;  %v117_v4 = vld [vmem:[#allocation7 + $0x20] sm:$0xff]  ;;  %v116_v18 = vld [vmem:[#allocation7 + $0x18] sm:$0xff] }
  0x3a   :  { %v1083_v3 = vpack.c.bf16 %v118_v1, %v114_v0  ;;  %v122_v5 = vld [vmem:[#allocation7 + $0x48] sm:$0xff]  ;;  %v1085_v7 = vpack.c.bf16 %v117_v4, %v113_v2  ;;  %v121_v9 = vld [vmem:[#allocation7 + $0x40] sm:$0xff]  ;;  %v120_v19 = vld [vmem:[#allocation7 + $0x38] sm:$0xff] }
  0x3b   :  { %v126_v6 = vld [vmem:[#allocation7 + $0x68] sm:$0xff]  ;;  %v125_v10 = vld [vmem:[#allocation7 + $0x60] sm:$0xff]  ;;  %v1147_v21 = vpack.c.bf16 %v120_v19, %v116_v18  ;;  %v115_v22 = vld [vmem:[#allocation7 + $0x10] sm:$0xff] }
  0x3c   :  { %v1087_v8 = vpack.c.bf16 %v126_v6, %v122_v5  ;;  %v130_v11 = vld [vmem:[#allocation7 + $0x88] sm:$0xff]  ;;  %1084 = vmatprep.subr.bf16.mxu0 %v1083_v3  ;;  %v1089_v13 = vpack.c.bf16 %v125_v10, %v121_v9  ;;  %v129_v14 = vld [vmem:[#allocation7 + $0x80] sm:$0xff]  ;;  %v119_v23 = vld [vmem:[#allocation7 + $0x30] sm:$0xff] }
  0x3d   :  { %v134_v12 = vld [vmem:[#allocation7 + $0xa8] sm:$0xff]  ;;  %1086 = vmatpush1.bf16.msra.mxu0 %v1085_v7  ;;  %v133_v15 = vld [vmem:[#allocation7 + $0xa0] sm:$0xff]  ;;  %v1149_v24 = vpack.c.bf16 %v119_v23, %v115_v22  ;;  %1148 = vmatprep.subr.bf16.mxu1 %v1147_v21  ;;  %v124_v26 = vld [vmem:[#allocation7 + $0x58] sm:$0xff] }
  0x3e   :  { %1088 = vmatprep.subr.bf16.mxu0 %v1087_v8  ;;  %v1091_v16 = vpack.c.bf16 %v134_v12, %v130_v11  ;;  %v138_v17 = vld [vmem:[#allocation7 + $0xc8] sm:$0xff]  ;;  %v1093_v25 = vpack.c.bf16 %v133_v15, %v129_v14  ;;  %v128_v27 = vld [vmem:[#allocation7 + $0x78] sm:$0xff]  ;;  %v123_v28 = vld [vmem:[#allocation7 + $0x50] sm:$0xff] }
  0x3f   :  { %v142_v20 = vld [vmem:[#allocation7 + $0xe8] sm:$0xff]  ;;  %v137_v30 = vld [vmem:[#allocation7 + $0xc0] sm:$0xff]  ;;  %1150 = vmatpush1.bf16.msra.mxu1 %v1149_v24  ;;  %v1151_v32 = vpack.c.bf16 %v128_v27, %v124_v26  ;;  %v127_v33 = vld [vmem:[#allocation7 + $0x70] sm:$0xff] }
  0x40   :  { %v1095_v29 = vpack.c.bf16 %v142_v20, %v138_v17  ;;  %v141_v31 = vld [vmem:[#allocation7 + $0xe0] sm:$0xff]  ;;  %v146_v34 = vld [vmem:[#allocation7 + $0x108] sm:$0xff]  ;;  %v1153_v36 = vpack.c.bf16 %v127_v33, %v123_v28  ;;  %v132_v37 = vld [vmem:[#allocation7 + $0x98] sm:$0xff] }
  0x41   :  { %1090 = vmatpush1.bf16.msra.mxu0 %v1089_v13  ;;  %v150_v35 = vld [vmem:[#allocation7 + $0x128] sm:$0xff]  ;;  %1152 = vmatprep.subr.bf16.mxu1 %v1151_v32  ;;  %v136_v38 = vld [vmem:[#allocation7 + $0xb8] sm:$0xff]  ;;  %v131_v39 = vld [vmem:[#allocation7 + $0x90] sm:$0xff]  ;;  %v1097_v41 = vpack.c.bf16 %v141_v31, %v137_v30 }
  0x42   :  { %1092 = vmatprep.subr.bf16.mxu0 %v1091_v16  ;;  %v135_v40 = vld [vmem:[#allocation7 + $0xb0] sm:$0xff]  ;;  %v145_v42 = vld [vmem:[#allocation7 + $0x100] sm:$0xff]  ;;  %v1155_v44 = vpack.c.bf16 %v136_v38, %v132_v37  ;;  %v1099_v45 = vpack.c.bf16 %v150_v35, %v146_v34  ;;  %v154_v46 = vld [vmem:[#allocation7 + $0x148] sm:$0xff] }
  0x43   :  { %v149_v43 = vld [vmem:[#allocation7 + $0x120] sm:$0xff]  ;;  %1154 = vmatpush1.bf16.msra.mxu1 %v1153_v36  ;;  %v1157_v47 = vpack.c.bf16 %v135_v40, %v131_v39  ;;  %v140_v48 = vld [vmem:[#allocation7 + $0xd8] sm:$0xff]  ;;  %v158_v50 = vld [vmem:[#allocation7 + $0x168] sm:$0xff] }
  0x44   :  { %v144_v49 = vld [vmem:[#allocation7 + $0xf8] sm:$0xff]  ;;  %1156 = vmatprep.subr.bf16.mxu1 %v1155_v44  ;;  %v139_v52 = vld [vmem:[#allocation7 + $0xd0] sm:$0xff]  ;;  %v1101_v54 = vpack.c.bf16 %v149_v43, %v145_v42  ;;  %v1103_v57 = vpack.c.bf16 %v158_v50, %v154_v46  ;;  %v153_v58 = vld [vmem:[#allocation7 + $0x140] sm:$0xff] }
  0x45   :  { %1094 = vmatpush1.bf16.msra.mxu0 %v1093_v25  ;;  %v1159_v51 = vpack.c.bf16 %v144_v49, %v140_v48  ;;  %v143_v53 = vld [vmem:[#allocation7 + $0xf0] sm:$0xff]  ;;  %v148_v55 = vld [vmem:[#allocation7 + $0x118] sm:$0xff]  ;;  %v157_v59 = vld [vmem:[#allocation7 + $0x160] sm:$0xff] }
  0x46   :  { %1096 = vmatprep.subr.bf16.mxu0 %v1095_v29  ;;  %v152_v56 = vld [vmem:[#allocation7 + $0x138] sm:$0xff]  ;;  %v162_v60 = vld [vmem:[#allocation7 + $0x188] sm:$0xff]  ;;  %v1161_v61 = vpack.c.bf16 %v143_v53, %v139_v52  ;;  %v147_v0 = vld [vmem:[#allocation7 + $0x110] sm:$0xff]  ;;  %v1105_v4 = vpack.c.bf16 %v157_v59, %v153_v58 }
  0x47   :  { %1158 = vmatpush1.bf16.msra.mxu1 %v1157_v47  ;;  %v166_v62 = vld [vmem:[#allocation7 + $0x1a8] sm:$0xff]  ;;  %v1163_v63 = vpack.c.bf16 %v152_v56, %v148_v55  ;;  %v151_v1 = vld [vmem:[#allocation7 + $0x130] sm:$0xff]  ;;  %v156_v2 = vld [vmem:[#allocation7 + $0x158] sm:$0xff] }
  0x48   :  { %1160 = vmatprep.subr.bf16.mxu1 %v1159_v51  ;;  %v160_v3 = vld [vmem:[#allocation7 + $0x178] sm:$0xff]  ;;  %v1107_v5 = vpack.c.bf16 %v166_v62, %v162_v60  ;;  %v161_v6 = vld [vmem:[#allocation7 + $0x180] sm:$0xff]  ;;  %v170_v8 = vld [vmem:[#allocation7 + $0x1c8] sm:$0xff]  ;;  %v1165_v9 = vpack.c.bf16 %v151_v1, %v147_v0 }
  0x49   :  { %1098 = vmatpush1.bf16.msra.mxu0 %v1097_v41  ;;  %v165_v7 = vld [vmem:[#allocation7 + $0x1a0] sm:$0xff]  ;;  %v174_v10 = vld [vmem:[#allocation7 + $0x1e8] sm:$0xff]  ;;  %v1167_v11 = vpack.c.bf16 %v160_v3, %v156_v2  ;;  %v155_v12 = vld [vmem:[#allocation7 + $0x150] sm:$0xff] }
  0x4a   :  { %1100 = vmatprep.subr.bf16.mxu0 %v1099_v45  ;;  %v159_v13 = vld [vmem:[#allocation7 + $0x170] sm:$0xff]  ;;  %v164_v14 = vld [vmem:[#allocation7 + $0x198] sm:$0xff]  ;;  %v1109_v16 = vpack.c.bf16 %v165_v7, %v161_v6  ;;  %v1111_v17 = vpack.c.bf16 %v174_v10, %v170_v8  ;;  %v169_v18 = vld [vmem:[#allocation7 + $0x1c0] sm:$0xff] }
  0x4b   :  { %1162 = vmatpush1.bf16.msra.mxu1 %v1161_v61  ;;  %v168_v15 = vld [vmem:[#allocation7 + $0x1b8] sm:$0xff]  ;;  %v173_v19 = vld [vmem:[#allocation7 + $0x1e0] sm:$0xff]  ;;  %v178_v20 = vld [vmem:[#allocation7 + $0x208] sm:$0xff]  ;;  %v1169_v21 = vpack.c.bf16 %v159_v13, %v155_v12 }
  0x4c   :  { %1164 = vmatprep.subr.bf16.mxu1 %v1163_v63  ;;  %v182_v22 = vld [vmem:[#allocation7 + $0x228] sm:$0xff]  ;;  %v1171_v23 = vpack.c.bf16 %v168_v15, %v164_v14  ;;  %v163_v24 = vld [vmem:[#allocation7 + $0x190] sm:$0xff]  ;;  %v172_v26 = vld [vmem:[#allocation7 + $0x1d8] sm:$0xff]  ;;  %v1113_v28 = vpack.c.bf16 %v173_v19, %v169_v18 }
  0x4d   :  { %1102 = vmatpush1.bf16.msra.mxu0 %v1101_v54  ;;  %v167_v25 = vld [vmem:[#allocation7 + $0x1b0] sm:$0xff]  ;;  %v176_v27 = vld [vmem:[#allocation7 + $0x1f8] sm:$0xff]  ;;  %v1115_v29 = vpack.c.bf16 %v182_v22, %v178_v20  ;;  %v177_v30 = vld [vmem:[#allocation7 + $0x200] sm:$0xff] }
  0x4e   :  { %1104 = vmatprep.subr.bf16.mxu0 %v1103_v57  ;;  %v181_v31 = vld [vmem:[#allocation7 + $0x220] sm:$0xff]  ;;  %v186_v32 = vld [vmem:[#allocation7 + $0x248] sm:$0xff]  ;;  %v1173_v33 = vpack.c.bf16 %v167_v25, %v163_v24  ;;  %v1175_v35 = vpack.c.bf16 %v176_v27, %v172_v26  ;;  %v171_v36 = vld [vmem:[#allocation7 + $0x1d0] sm:$0xff] }
  0x4f   :  { %1166 = vmatpush1.bf16.msra.mxu1 %v1165_v9  ;;  %v190_v34 = vld [vmem:[#allocation7 + $0x268] sm:$0xff]  ;;  %v175_v37 = vld [vmem:[#allocation7 + $0x1f0] sm:$0xff]  ;;  %v180_v38 = vld [vmem:[#allocation7 + $0x218] sm:$0xff]  ;;  %v1117_v40 = vpack.c.bf16 %v181_v31, %v177_v30 }
  0x50   :  { %1168 = vmatprep.subr.bf16.mxu1 %v1167_v11  ;;  %v184_v39 = vld [vmem:[#allocation7 + $0x238] sm:$0xff]  ;;  %v1119_v41 = vpack.c.bf16 %v190_v34, %v186_v32  ;;  %v185_v42 = vld [vmem:[#allocation7 + $0x240] sm:$0xff]  ;;  %v194_v44 = vld [vmem:[#allocation7 + $0x288] sm:$0xff]  ;;  %v1177_v45 = vpack.c.bf16 %v175_v37, %v171_v36 }
  0x51   :  { %1106 = vmatpush1.bf16.msra.mxu0 %v1105_v4  ;;  %v189_v43 = vld [vmem:[#allocation7 + $0x260] sm:$0xff]  ;;  %v198_v46 = vld [vmem:[#allocation7 + $0x2a8] sm:$0xff]  ;;  %v1179_v47 = vpack.c.bf16 %v184_v39, %v180_v38  ;;  %v179_v48 = vld [vmem:[#allocation7 + $0x210] sm:$0xff] }
  0x52   :  { %1108 = vmatprep.subr.bf16.mxu0 %v1107_v5  ;;  %v183_v49 = vld [vmem:[#allocation7 + $0x230] sm:$0xff]  ;;  %v188_v50 = vld [vmem:[#allocation7 + $0x258] sm:$0xff]  ;;  %v1121_v52 = vpack.c.bf16 %v189_v43, %v185_v42  ;;  %v193_v53 = vld [vmem:[#allocation7 + $0x280] sm:$0xff]  ;;  %v1123_v54 = vpack.c.bf16 %v198_v46, %v194_v44 }
  0x53   :  { %1170 = vmatpush1.bf16.msra.mxu1 %v1169_v21  ;;  %v192_v51 = vld [vmem:[#allocation7 + $0x278] sm:$0xff]  ;;  %v197_v55 = vld [vmem:[#allocation7 + $0x2a0] sm:$0xff]  ;;  %v202_v56 = vld [vmem:[#allocation7 + $0x2c8] sm:$0xff]  ;;  %v1181_v58 = vpack.c.bf16 %v183_v49, %v179_v48 }
  0x54   :  { %1172 = vmatprep.subr.bf16.mxu1 %v1171_v23  ;;  %v206_v57 = vld [vmem:[#allocation7 + $0x2e8] sm:$0xff]  ;;  %v1183_v59 = vpack.c.bf16 %v192_v51, %v188_v50  ;;  %v187_v60 = vld [vmem:[#allocation7 + $0x250] sm:$0xff]  ;;  %v81_v62 = vld [vmem:[#allocation2] sm:$0xff]  ;;  %v1125_v1 = vpack.c.bf16 %v197_v55, %v193_v53 }
  0x55   :  { %1110 = vmatpush1.bf16.msra.mxu0 %v1109_v16  ;;  %v191_v61 = vld [vmem:[#allocation7 + $0x270] sm:$0xff]  ;;  %v196_v63 = vld [vmem:[#allocation7 + $0x298] sm:$0xff]  ;;  %327 = vmatprep.mubr.f32.mxu0 %v81_v62  ;;  %v1127_v2 = vpack.c.bf16 %v206_v57, %v202_v56  ;;  %v201_v3 = vld [vmem:[#allocation7 + $0x2c0] sm:$0xff] }
  0x56   :  { %1112 = vmatprep.subr.bf16.mxu0 %v1111_v17  ;;  %v200_v0 = vld [vmem:[#allocation7 + $0x2b8] sm:$0xff]  ;;  %488 = vmatprep.mubr.f32.mxu1 %v81_v62  ;;  %v205_v4 = vld [vmem:[#allocation7 + $0x2e0] sm:$0xff]  ;;  %v210_v5 = vld [vmem:[#allocation7 + $0x308] sm:$0xff]  ;;  %v1185_v6 = vpack.c.bf16 %v191_v61, %v187_v60 }
  0x57   :  { %1174 = vmatpush1.bf16.msra.mxu1 %v1173_v33  ;;  %v214_v7 = vld [vmem:[#allocation7 + $0x328] sm:$0xff]  ;;  %v1187_v8 = vpack.c.bf16 %v200_v0, %v196_v63  ;;  %v195_v9 = vld [vmem:[#allocation7 + $0x290] sm:$0xff]  ;;  %v204_v11 = vld [vmem:[#allocation7 + $0x2d8] sm:$0xff]  ;;  %v1129_v13 = vpack.c.bf16 %v205_v4, %v201_v3 }
  0x58   :  { %1176 = vmatprep.subr.bf16.mxu1 %v1175_v35  ;;  %v199_v10 = vld [vmem:[#allocation7 + $0x2b0] sm:$0xff]  ;;  %v208_v12 = vld [vmem:[#allocation7 + $0x2f8] sm:$0xff]  ;;  %v1131_v14 = vpack.c.bf16 %v214_v7, %v210_v5  ;;  %v209_v15 = vld [vmem:[#allocation7 + $0x300] sm:$0xff] }
  0x59   :  { %1114 = vmatpush1.bf16.msra.mxu0 %v1113_v28  ;;  %v213_v16 = vld [vmem:[#allocation7 + $0x320] sm:$0xff]  ;;  %v218_v17 = vld [vmem:[#allocation7 + $0x348] sm:$0xff]  ;;  %v1189_v18 = vpack.c.bf16 %v199_v10, %v195_v9  ;;  %v1191_v20 = vpack.c.bf16 %v208_v12, %v204_v11  ;;  %v203_v21 = vld [vmem:[#allocation7 + $0x2d0] sm:$0xff] }
  0x5a   :  { %1116 = vmatprep.subr.bf16.mxu0 %v1115_v29  ;;  %v222_v19 = vld [vmem:[#allocation7 + $0x368] sm:$0xff]  ;;  %v207_v22 = vld [vmem:[#allocation7 + $0x2f0] sm:$0xff]  ;;  %v212_v23 = vld [vmem:[#allocation7 + $0x318] sm:$0xff]  ;;  %v1133_v25 = vpack.c.bf16 %v213_v16, %v209_v15 }
  0x5b   :  { %1178 = vmatpush1.bf16.msra.mxu1 %v1177_v45  ;;  %v216_v24 = vld [vmem:[#allocation7 + $0x338] sm:$0xff]  ;;  %v1135_v26 = vpack.c.bf16 %v222_v19, %v218_v17  ;;  %v217_v27 = vld [vmem:[#allocation7 + $0x340] sm:$0xff]  ;;  %v226_v29 = vld [vmem:[#allocation7 + $0x388] sm:$0xff]  ;;  %v1193_v30 = vpack.c.bf16 %v207_v22, %v203_v21 }
  0x5c   :  { %1180 = vmatprep.subr.bf16.mxu1 %v1179_v47  ;;  %v221_v28 = vld [vmem:[#allocation7 + $0x360] sm:$0xff]  ;;  %v230_v31 = vld [vmem:[#allocation7 + $0x3a8] sm:$0xff]  ;;  %v1195_v32 = vpack.c.bf16 %v216_v24, %v212_v23  ;;  %v211_v33 = vld [vmem:[#allocation7 + $0x310] sm:$0xff] }
  0x5d   :  { %1118 = vmatpush1.bf16.msra.mxu0 %v1117_v40  ;;  %v215_v34 = vld [vmem:[#allocation7 + $0x330] sm:$0xff]  ;;  %v220_v35 = vld [vmem:[#allocation7 + $0x358] sm:$0xff]  ;;  %v1137_v37 = vpack.c.bf16 %v221_v28, %v217_v27  ;;  %v1139_v38 = vpack.c.bf16 %v230_v31, %v226_v29  ;;  %v225_v39 = vld [vmem:[#allocation7 + $0x380] sm:$0xff] }
  0x5e   :  { %1120 = vmatprep.subr.bf16.mxu0 %v1119_v41  ;;  %v224_v36 = vld [vmem:[#allocation7 + $0x378] sm:$0xff]  ;;  %v229_v40 = vld [vmem:[#allocation7 + $0x3a0] sm:$0xff]  ;;  %v234_v41 = vld [vmem:[#allocation7 + $0x3c8] sm:$0xff]  ;;  %v1197_v42 = vpack.c.bf16 %v215_v34, %v211_v33 }
  0x5f   :  { %1182 = vmatpush1.bf16.msra.mxu1 %v1181_v58  ;;  %v238_v43 = vld [vmem:[#allocation7 + $0x3e8] sm:$0xff]  ;;  %v1199_v44 = vpack.c.bf16 %v224_v36, %v220_v35  ;;  %v219_v45 = vld [vmem:[#allocation7 + $0x350] sm:$0xff]  ;;  %v228_v47 = vld [vmem:[#allocation7 + $0x398] sm:$0xff]  ;;  %v1141_v49 = vpack.c.bf16 %v229_v40, %v225_v39 }
  0x60   :  { %1184 = vmatprep.subr.bf16.mxu1 %v1183_v59  ;;  %v223_v46 = vld [vmem:[#allocation7 + $0x370] sm:$0xff]  ;;  %v232_v48 = vld [vmem:[#allocation7 + $0x3b8] sm:$0xff]  ;;  %v1143_v50 = vpack.c.bf16 %v238_v43, %v234_v41  ;;  %v233_v51 = vld [vmem:[#allocation7 + $0x3c0] sm:$0xff] }
  0x61   :  { %1122 = vmatpush1.bf16.msra.mxu0 %v1121_v52  ;;  %v237_v52 = vld [vmem:[#allocation7 + $0x3e0] sm:$0xff]  ;;  %v1201_v53 = vpack.c.bf16 %v223_v46, %v219_v45  ;;  %v227_v55 = vld [vmem:[#allocation7 + $0x390] sm:$0xff]  ;;  %v236_v57 = vld [vmem:[#allocation7 + $0x3d8] sm:$0xff] }
  0x62   :  { %1124 = vmatprep.subr.bf16.mxu0 %v1123_v54  ;;  %v1203_v54 = vpack.c.bf16 %v232_v48, %v228_v47  ;;  %v231_v56 = vld [vmem:[#allocation7 + $0x3b0] sm:$0xff]  ;;  %v240_v58 = vld [vmem:[#allocation7 + $0x3f8] sm:$0xff]  ;;  %v1145_v59 = vpack.c.bf16 %v237_v52, %v233_v51  ;;  %v65_v0 = vld [vmem:[%s2002_s0] sm:$0xff] }
  0x63   :  { %1186 = vmatpush1.bf16.msra.mxu1 %v1185_v6  ;;  %v1205_v60 = vpack.c.bf16 %v231_v56, %v227_v55  ;;  %v1207_v61 = vpack.c.bf16 %v240_v58, %v236_v57  ;;  %v235_v62 = vld [vmem:[#allocation7 + $0x3d0] sm:$0xff]  ;;  %v66_v3 = vld [vmem:[%s2002_s0 + $0x8] sm:$0xff]  ;;  %v84_v6 = vld [vmem:[#allocation2 + $0x18] sm:$0xff] }
  0x64   :  { %1188 = vmatprep.subr.bf16.mxu1 %v1187_v8  ;;  %v239_v63 = vld [vmem:[#allocation7 + $0x3f0] sm:$0xff]  ;;  %v68_v7 = vld [vmem:[%s2002_s0 + $0x18] sm:$0xff]  ;;  %v85_v8 = vld [vmem:[#allocation2 + $0x20] sm:$0xff] }
  0x65   :  { %1126 = vmatpush1.bf16.msra.mxu0 %v1125_v1  ;;  %v82_v1 = vld [vmem:[#allocation2 + $0x8] sm:$0xff]  ;;  %v83_v4 = vld [vmem:[#allocation2 + $0x10] sm:$0xff]  ;;  %v69_v9 = vld [vmem:[%s2002_s0 + $0x20] sm:$0xff] }
  0x66   :  { %1128 = vmatprep.subr.bf16.mxu0 %v1127_v2  ;;  %v1209_v2 = vpack.c.bf16 %v239_v63, %v235_v62  ;;  %v67_v5 = vld [vmem:[%s2002_s0 + $0x10] sm:$0xff]  ;;  %v86_v10 = vld [vmem:[#allocation2 + $0x28] sm:$0xff]  ;;  %v72_v15 = vld [vmem:[%s2002_s0 + $0x38] sm:$0xff] }
  0x67   :  { %1190 = vmatpush1.bf16.msra.mxu1 %v1189_v18  ;;  %v70_v11 = vld [vmem:[%s2002_s0 + $0x28] sm:$0xff]  ;;  %v87_v12 = vld [vmem:[#allocation2 + $0x30] sm:$0xff]  ;;  %v89_v16 = vld [vmem:[#allocation2 + $0x40] sm:$0xff] }
  0x68   :  { %1192 = vmatprep.subr.bf16.mxu1 %v1191_v20  ;;  %v73_v17 = vld [vmem:[%s2002_s0 + $0x40] sm:$0xff]  ;;  %v90_v18 = vld [vmem:[#allocation2 + $0x48] sm:$0xff]  ;;  %v91_v20 = vld [vmem:[#allocation2 + $0x50] sm:$0xff] }
  0x69   :  { %1130 = vmatpush1.bf16.msra.mxu0 %v1129_v13  ;;  %v71_v13 = vld [vmem:[%s2002_s0 + $0x30] sm:$0xff]  ;;  %v74_v19 = vld [vmem:[%s2002_s0 + $0x48] sm:$0xff]  ;;  %v92_v22 = vld [vmem:[#allocation2 + $0x58] sm:$0xff] }
  0x6a   :  { %1132 = vmatprep.subr.bf16.mxu0 %v1131_v14  ;;  %v88_v14 = vld [vmem:[#allocation2 + $0x38] sm:$0xff]  ;;  %v75_v21 = vld [vmem:[%s2002_s0 + $0x50] sm:$0xff]  ;;  %v93_v24 = vld [vmem:[#allocation2 + $0x60] sm:$0xff] }
  0x6b   :  { %1194 = vmatpush1.bf16.msra.mxu1 %v1193_v30  ;;  %v76_v23 = vld [vmem:[%s2002_s0 + $0x58] sm:$0xff]  ;;  %v78_v27 = vld [vmem:[%s2002_s0 + $0x68] sm:$0xff]  ;;  %v95_v28 = vld [vmem:[#allocation2 + $0x70] sm:$0xff] }
  0x6c   :  { %1196 = vmatprep.subr.bf16.mxu1 %v1195_v32  ;;  %v79_v29 = vld [vmem:[%s2002_s0 + $0x70] sm:$0xff]  ;;  %v96_v30 = vld [vmem:[#allocation2 + $0x78] sm:$0xff]  ;;  %v243_v32 = vlaneseq  ;;  %v241_v35 = vld [vmem:[%s2006_s4] sm:$0xf] }
  0x6d   :  { %1134 = vmatpush1.bf16.msra.mxu0 %v1133_v25  ;;  %v77_v25 = vld [vmem:[%s2002_s0 + $0x60] sm:$0xff]  ;;  %v80_v31 = vld [vmem:[%s2002_s0 + $0x78] sm:$0xff]  ;;  %s1601_s0 = smov [#allocation9]  }
  0x6e   :  { %1136 = vmatprep.subr.bf16.mxu0 %v1135_v26  ;;  %v94_v26 = vld [vmem:[#allocation2 + $0x68] sm:$0xff]  ;;  %v244_v33 = vshrl.u32 %v243_v32, 7  ;;  %s1018_s4 = sshll.u32 %s1601_s0, 4  ;;  %s1019_s4 = int_to_ptr.vmem [resolvable:$true] %s1018_s4 }
  0x6f   :  { %1198 = vmatpush1.bf16.msra.mxu1 %v1197_v42  ;;  %s1542_s2 = scalar_lea.vmem %s1019_s4, 2048  ;;  %p1547_p11 = scmp.lt.s32.totalorder %s1019_s4, %s1019_s4 }
  0x70   :  { %1200 = vmatprep.subr.bf16.mxu1 %v1199_v44  ;;  %v245_v34 = vsub.s32 0, %v244_v33  ;;  %v249_v36 = vsub.s32 1, %v244_v33  ;;  %v253_v39 = vsub.s32 2, %v244_v33  ;;  %v257_v41 = vsub.s32 3, %v244_v33  ;;  %p1543_p10 = scmp.ne.s32.totalorder %s1019_s4, %s1542_s2  ;;  %p1548_p12 = scmp.lt.s32.totalorder %s1542_s2, %s1542_s2 }
  0x71   :  { %1138 = vmatpush1.bf16.msra.mxu0 %v1137_v37 }
  0x72   :  { %1140 = vmatprep.subr.bf16.mxu0 %v1139_v38  ;;  %v1738_v37 = vrot.slane %v241_v35, %v245_v34  ;;  %v1740_v38 = vrot.slane %v241_v35, %v249_v36  ;;  %v1744_v45 = vrot.slane %v241_v35, %v253_v39  ;;  %p1549_p13 = por %p1548_p12, %p1547_p11 }
  0x73   :  { %1202 = vmatpush1.bf16.msra.mxu1 %v1201_v53 }
  0x74   :  { %1204 = vmatprep.subr.bf16.mxu1 %v1203_v54  ;;  %p1550_p0 = pnand %p1549_p13, %p1543_p10 }
  0x75   :  { %1142 = vmatpush1.bf16.msra.mxu0 %v1141_v49  ;;  %v1746_v49 = vrot.slane %v241_v35, %v257_v41 }
  0x76   :  { %1144 = vmatprep.subr.bf16.mxu0 %v1143_v50 }
  0x77   :  { %1206 = vmatpush1.bf16.msra.mxu1 %v1205_v60 }
  0x78   :  { %1208 = vmatprep.subr.bf16.mxu1 %v1207_v61 }
  0x79   :  { %1146 = vmatpush1.bf16.msra.mxu0 %v1145_v59 }
  0x7b   :  { %1210 = vmatpush1.bf16.msra.mxu1 %v1209_v2 }
  0x7c   :  { %328 = vmatmul.mubr.f32.vlgmr.msra.gmra.mrb[0].mxu0 %v65_v0 }
  0x7d   :  { %333 = vmatprep.mubr.f32.mxu0 %v82_v1 }
  0x7e   :  { %489 = vmatmul.mubr.f32.vlgmr.msra.gmra.mrb[0].mxu1 %v65_v0 }
  0x7f   :  { %494 = vmatprep.mubr.f32.mxu1 %v82_v1 }
  0x80   :  { %334 = vmatmul.mubr.f32.gmra.mrb[2].mxu0 %v66_v3 }
  0x81   :  { %339 = vmatprep.mubr.f32.mxu0 %v83_v4 }
  0x82   :  { %495 = vmatmul.mubr.f32.gmra.mrb[2].mxu1 %v66_v3 }
  0x83   :  { %500 = vmatprep.mubr.f32.mxu1 %v83_v4 }
  0x84   :  { %340 = vmatmul.mubr.f32.gmra.mrb[4].mxu0 %v67_v5 }
  0x85   :  { %345 = vmatprep.mubr.f32.mxu0 %v84_v6 }
  0x86   :  { %501 = vmatmul.mubr.f32.gmra.mrb[4].mxu1 %v67_v5 }
  0x87   :  { %506 = vmatprep.mubr.f32.mxu1 %v84_v6 }
  0x88   :  { %346 = vmatmul.mubr.f32.gmra.mrb[6].mxu0 %v68_v7 }
  0x89   :  { %351 = vmatprep.mubr.f32.mxu0 %v85_v8 }
  0x8a   :  { %507 = vmatmul.mubr.f32.gmra.mrb[6].mxu1 %v68_v7 }
  0x8b   :  { %512 = vmatprep.mubr.f32.mxu1 %v85_v8 }
  0x8c   :  { %352 = vmatmul.mubr.f32.gmra.mrb[8].mxu0 %v69_v9 }
  0x8d   :  { %357 = vmatprep.mubr.f32.mxu0 %v86_v10 }
  0x8e   :  { %513 = vmatmul.mubr.f32.gmra.mrb[8].mxu1 %v69_v9 }
  0x8f   :  { %518 = vmatprep.mubr.f32.mxu1 %v86_v10 }
  0x90   :  { %358 = vmatmul.mubr.f32.gmra.mrb[10].mxu0 %v70_v11 }
  0x91   :  { %363 = vmatprep.mubr.f32.mxu0 %v87_v12 }
  0x92   :  { %519 = vmatmul.mubr.f32.gmra.mrb[10].mxu1 %v70_v11 }
  0x93   :  { %524 = vmatprep.mubr.f32.mxu1 %v87_v12 }
  0x94   :  { %364 = vmatmul.mubr.f32.gmra.mrb[12].mxu0 %v71_v13 }
  0x95   :  { %369 = vmatprep.mubr.f32.mxu0 %v88_v14 }
  0x96   :  { %525 = vmatmul.mubr.f32.gmra.mrb[12].mxu1 %v71_v13 }
  0x97   :  { %530 = vmatprep.mubr.f32.mxu1 %v88_v14 }
  0x98   :  { %370 = vmatmul.mubr.f32.gmra.mrb[14].mxu0 %v72_v15 }
  0x99   :  { %375 = vmatprep.mubr.f32.mxu0 %v89_v16 }
  0x9a   :  { %531 = vmatmul.mubr.f32.gmra.mrb[14].mxu1 %v72_v15 }
  0x9b   :  { %536 = vmatprep.mubr.f32.mxu1 %v89_v16 }
  0x9c   :  { %376 = vmatmul.mubr.f32.gmra.mrb[16].mxu0 %v73_v17 }
  0x9d   :  { %381 = vmatprep.mubr.f32.mxu0 %v90_v18 }
  0x9e   :  { %537 = vmatmul.mubr.f32.gmra.mrb[16].mxu1 %v73_v17 }
  0x9f   :  { %542 = vmatprep.mubr.f32.mxu1 %v90_v18 }
  0xa0   :  { %382 = vmatmul.mubr.f32.gmra.mrb[18].mxu0 %v74_v19 }
  0xa1   :  { %387 = vmatprep.mubr.f32.mxu0 %v91_v20 }
  0xa2   :  { %543 = vmatmul.mubr.f32.gmra.mrb[18].mxu1 %v74_v19 }
  0xa3   :  { %548 = vmatprep.mubr.f32.mxu1 %v91_v20 }
  0xa4   :  { %388 = vmatmul.mubr.f32.gmra.mrb[20].mxu0 %v75_v21 }
  0xa5   :  { %393 = vmatprep.mubr.f32.mxu0 %v92_v22 }
  0xa6   :  { %549 = vmatmul.mubr.f32.gmra.mrb[20].mxu1 %v75_v21 }
  0xa7   :  { %554 = vmatprep.mubr.f32.mxu1 %v92_v22 }
  0xa8   :  { %394 = vmatmul.mubr.f32.gmra.mrb[22].mxu0 %v76_v23 }
  0xa9   :  { %399 = vmatprep.mubr.f32.mxu0 %v93_v24 }
  0xaa   :  { %555 = vmatmul.mubr.f32.gmra.mrb[22].mxu1 %v76_v23 }
  0xab   :  { %560 = vmatprep.mubr.f32.mxu1 %v93_v24 }
  0xac   :  { %400 = vmatmul.mubr.f32.gmra.mrb[24].mxu0 %v77_v25 }
  0xad   :  { %405 = vmatprep.mubr.f32.mxu0 %v94_v26 }
  0xae   :  { %561 = vmatmul.mubr.f32.gmra.mrb[24].mxu1 %v77_v25 }
  0xaf   :  { %566 = vmatprep.mubr.f32.mxu1 %v94_v26 }
  0xb0   :  { %406 = vmatmul.mubr.f32.gmra.mrb[26].mxu0 %v78_v27 }
  0xb1   :  { %411 = vmatprep.mubr.f32.mxu0 %v95_v28 }
  0xb2   :  { %567 = vmatmul.mubr.f32.gmra.mrb[26].mxu1 %v78_v27 }
  0xb3   :  { %572 = vmatprep.mubr.f32.mxu1 %v95_v28 }
  0xb4   :  { %412 = vmatmul.mubr.f32.gmra.mrb[28].mxu0 %v79_v29 }
  0xb5   :  { %417 = vmatprep.mubr.f32.mxu0 %v96_v30 }
  0xb6   :  { %573 = vmatmul.mubr.f32.gmra.mrb[28].mxu1 %v79_v29 }
  0xb7   :  { %578 = vmatprep.mubr.f32.mxu1 %v96_v30 }
  0xb8   :  { %418 = vmatmul.mubr.f32.gmra.mrb[30].mxu0 %v80_v31 }
  0xba   :  { %579 = vmatmul.mubr.f32.gmra.mrb[30].mxu1 %v80_v31 }
 0x14f   :  { %v329_v40 = vpop.f32.mrb[0].mxu0 }
 0x150   :  { %v330_v42 = vadd.f32 %v329_v40, %v1738_v37  ;;  %v331_v43 = vpop.f32.mrb[1].mxu0 }
 0x151   :  { %v332_v44 = vadd.f32 %v331_v43, %v1740_v38  ;;  %v490_v52 = vpop.f32.mrb[0].mxu1 }
 0x152   :  { %v1035_v46 = vmul.f32 -1.442695, %v330_v42  ;;  %v491_v54 = vadd.f32 %v490_v52, %v1744_v45  ;;  %v492_v55 = vpop.f32.mrb[1].mxu1 }
 0x153   :  { %v1051_v47 = vmul.f32 -1.442695, %v332_v44  ;;  %v335_v48 = vpop.f32.mrb[2].mxu0  ;;  %v493_v60 = vadd.f32 %v492_v55, %v1746_v49 }
 0x154   :  { %1220 = vpow2.f32 %v1035_v46  ;;  %v336_v50 = vadd.f32 %v335_v48, %v1738_v37  ;;  %v337_v51 = vpop.f32.mrb[3].mxu0  ;;  %v1067_v59 = vmul.f32 -1.442695, %v491_v54 }
 0x155   :  { %1222 = vpow2.f32 %v1051_v47  ;;  %v338_v53 = vadd.f32 %v337_v51, %v1740_v38  ;;  %v496_v63 = vpop.f32.mrb[2].mxu1 }
 0x156   :  { %v1036_v56 = vmul.f32 -1.442695, %v336_v50  ;;  %v497_v1 = vadd.f32 %v496_v63, %v1744_v45  ;;  %v498_v2 = vpop.f32.mrb[3].mxu1 }
 0x157   :  { %v1052_v57 = vmul.f32 -1.442695, %v338_v53  ;;  %v341_v58 = vpop.f32.mrb[4].mxu0  ;;  %v499_v7 = vadd.f32 %v498_v2, %v1746_v49 }
 0x158   :  { %1224 = vpow2.f32 %v1036_v56  ;;  %v342_v61 = vadd.f32 %v341_v58, %v1738_v37  ;;  %v343_v62 = vpop.f32.mrb[5].mxu0  ;;  %v1068_v6 = vmul.f32 -1.442695, %v497_v1  ;;  %v97_v58 = vld [vmem:[#allocation5] sm:$0xff] }
 0x159   :  { %1226 = vpow2.f32 %v1052_v57  ;;  %v344_v0 = vadd.f32 %v343_v62, %v1740_v38  ;;  %v502_v10 = vpop.f32.mrb[4].mxu1 }
 0x15a   :  { %v1037_v3 = vmul.f32 -1.442695, %v342_v61  ;;  %1228 = vpow2.f32 %v1067_v59  ;;  %v1758_v12 = vpop.f32.mrb[5].mxu1  ;;  %v503_v46 = vadd.f32 %v502_v10, %v1744_v45 }
 0x15b   :  { %v1053_v4 = vmul.f32 -1.442695, %v344_v0  ;;  %v347_v5 = vpop.f32.mrb[6].mxu0  ;;  %1230 = vtanh.f32 %v493_v60 }
 0x15c   :  { %1232 = vpow2.f32 %v1037_v3  ;;  %v348_v8 = vadd.f32 %v347_v5, %v1738_v37  ;;  %v349_v9 = vpop.f32.mrb[7].mxu0  ;;  %v1069_v62 = vmul.f32 -1.442695, %v503_v46 }
 0x15d   :  { %1234 = vpow2.f32 %v1053_v4  ;;  %v350_v11 = vadd.f32 %v349_v9, %v1740_v38  ;;  %v1761_v22 = vpop.f32.mrb[6].mxu1  ;;  %v98_v9 = vld [vmem:[#allocation5 + $0x8] sm:$0xff] }
 0x15e   :  { %v1221_v13 = vpop.eup %1220  ;;  %v1038_v14 = vmul.f32 -1.442695, %v348_v8  ;;  %1236 = vpow2.f32 %v1068_v6  ;;  %v1764_v24 = vpop.f32.mrb[7].mxu1 }
 0x15f   :  { %v1223_v15 = vpop.eup %1222  ;;  %v633_v16 = vadd.f32 1.0, %v1221_v13  ;;  %v1054_v17 = vmul.f32 -1.442695, %v350_v11  ;;  %v353_v18 = vpop.f32.mrb[8].mxu0  ;;  %1238 = vtanh.f32 %v499_v7  ;;  %v505_v11 = vadd.f32 %v1758_v12, %v1746_v49 }
 0x160   :  { %v729_v19 = vadd.f32 1.0, %v1223_v15  ;;  %1240 = vpow2.f32 %v1038_v14  ;;  %v354_v20 = vadd.f32 %v353_v18, %v1738_v37  ;;  %v355_v21 = vpop.f32.mrb[9].mxu0 }
 0x161   :  { %1242 = vrcp.f32 %v633_v16  ;;  %v356_v23 = vadd.f32 %v355_v21, %v1740_v38  ;;  %v1767_v35 = vpop.f32.mrb[8].mxu1  ;;  %v509_v21 = vadd.f32 %v1761_v22, %v1744_v45 }
 0x162   :  { %v1225_v25 = vpop.eup %1224  ;;  %1244 = vrcp.f32 %v729_v19  ;;  %v1039_v26 = vmul.f32 -1.442695, %v354_v20  ;;  %v1769_v40 = vpop.f32.mrb[9].mxu1 }
 0x163   :  { %v1227_v27 = vpop.eup %1226  ;;  %v634_v28 = vadd.f32 1.0, %v1225_v25  ;;  %1246 = vpow2.f32 %v1054_v17  ;;  %v359_v29 = vpop.f32.mrb[10].mxu0  ;;  %v1055_v32 = vmul.f32 -1.442695, %v356_v23 }
 0x164   :  { %v1229_v30 = vpop.eup %1228  ;;  %v730_v31 = vadd.f32 1.0, %v1227_v27  ;;  %1248 = vpow2.f32 %v1039_v26  ;;  %v360_v33 = vadd.f32 %v359_v29, %v1738_v37  ;;  %v361_v34 = vpop.f32.mrb[11].mxu0 }
 0x165   :  { %v1231_v36 = vpop.eup %1230  ;;  %1250 = vrcp.f32 %v634_v28  ;;  %v825_v39 = vadd.f32 1.0, %v1229_v30  ;;  %v362_v42 = vadd.f32 %v361_v34, %v1740_v38  ;;  %v1773_v53 = vpop.f32.mrb[10].mxu1  ;;  %v1070_v34 = vmul.f32 -1.442695, %v509_v21 }
 0x166   :  { %v1233_v41 = vpop.eup %1232  ;;  %1252 = vrcp.f32 %v730_v31  ;;  %v1040_v51 = vmul.f32 -1.442695, %v360_v33  ;;  %v1775_v56 = vpop.f32.mrb[11].mxu1 }
 0x167   :  { %v1235_v43 = vpop.eup %1234  ;;  %v635_v44 = vadd.f32 1.0, %v1233_v41  ;;  %1254 = vrcp.f32 %v825_v39  ;;  %v365_v47 = vpop.f32.mrb[12].mxu0  ;;  %v1056_v59 = vmul.f32 -1.442695, %v362_v42 }
 0x168   :  { %v1237_v48 = vpop.eup %1236  ;;  %v731_v50 = vadd.f32 1.0, %v1235_v43  ;;  %1256 = vpow2.f32 %v1055_v32  ;;  %v367_v52 = vpop.f32.mrb[13].mxu0  ;;  %v366_v2 = vadd.f32 %v365_v47, %v1738_v37 }
 0x169   :  { %v1239_v54 = vpop.eup %1238  ;;  %1258 = vrcp.f32 %v635_v44  ;;  %v826_v55 = vadd.f32 1.0, %v1237_v48  ;;  %v1778_v4 = vpop.f32.mrb[12].mxu1  ;;  %v368_v16 = vadd.f32 %v367_v52, %v1740_v38  ;;  %v511_v48 = vadd.f32 %v1764_v24, %v1746_v49  ;;  %v99_v24 = vld [vmem:[#allocation5 + $0x10] sm:$0xff] }
 0x16a   :  { %v1241_v57 = vpop.eup %1240  ;;  %1260 = vrcp.f32 %v731_v50  ;;  %v1780_v7 = vpop.f32.mrb[13].mxu1  ;;  %v1041_v20 = vmul.f32 -1.442695, %v366_v2 }
 0x16b   :  { %v1243_v60 = vpop.eup %1242  ;;  %v636_v61 = vadd.f32 1.0, %v1241_v57  ;;  %1262 = vrcp.f32 %v826_v55  ;;  %v371_v63 = vpop.f32.mrb[14].mxu0  ;;  %v1057_v32 = vmul.f32 -1.442695, %v368_v16 }
 0x16c   :  { %v1245_v0 = vpop.eup %1244  ;;  %v905_v1 = vmul.f32 %v1243_v60, %v1231_v36  ;;  %1264 = vpow2.f32 %v1040_v51  ;;  %v373_v3 = vpop.f32.mrb[15].mxu0  ;;  %v372_v36 = vadd.f32 %v371_v63, %v1738_v37 }
 0x16d   :  { %v1247_v5 = vpop.eup %1246  ;;  %v889_v6 = vmul.f32 %v1245_v0, %v97_v58  ;;  %1266 = vrcp.f32 %v636_v61  ;;  %v1791_v25 = vpop.f32.mrb[14].mxu1  ;;  %v374_v50 = vadd.f32 %v373_v3, %v1740_v38 }
 0x16e   :  { %v1249_v8 = vpop.eup %1248  ;;  %v732_v10 = vadd.f32 1.0, %v1247_v5  ;;  %1268 = vpow2.f32 %v1056_v59  ;;  %v1793_v27 = vpop.f32.mrb[15].mxu1  ;;  %v1042_v58 = vmul.f32 -1.442695, %v372_v36 }
 0x16f   :  { %v1251_v13 = vpop.eup %1250  ;;  %v921_v14 = vadd.f32 %v905_v1, %v889_v6  ;;  %v637_v15 = vadd.f32 1.0, %v1249_v8  ;;  %1270 = vpow2.f32 %v1069_v62  ;;  %v1785_v17 = vpop.f32.mrb[16].mxu0  ;;  %v1058_v5 = vmul.f32 -1.442695, %v374_v50 }
 0x170   :  { %v1253_v18 = vpop.eup %1252  ;;  %1272 = vrcp.f32 %v732_v10  ;;  %v906_v19 = vmul.f32 %v1251_v13, %v1239_v54  ;;  %v1789_v23 = vpop.f32.mrb[17].mxu0  ;;  %v515_v54 = vadd.f32 %v1767_v35, %v1744_v45  ;;  %v517_v10 = vadd.f32 %v1769_v40, %v1746_v49 }
 0x171   :  { %v1255_v12 = vpop.eup %1254  ;;  %v890_v26 = vmul.f32 %v1253_v18, %v98_v9  ;;  %1274 = vtanh.f32 %v921_v14  ;;  %985 = vst [vmem:[#allocation9] sm:$0xff] %v921_v14  ;;  %v1801_v42 = vpop.f32.mrb[16].mxu1 }
 0x172   :  { %v1257_v28 = vpop.eup %1256  ;;  %1276 = vrcp.f32 %v637_v15  ;;  %v1808_v46 = vpop.f32.mrb[17].mxu1  ;;  %v1071_v9 = vmul.f32 -1.442695, %v515_v54 }
 0x173   :  { %v1795_v29 = vpop.eup %1258  ;;  %v733_v30 = vadd.f32 1.0, %v1257_v28  ;;  %v922_v31 = vadd.f32 %v906_v19, %v890_v26  ;;  %1278 = vtanh.f32 %v505_v11  ;;  %v383_v33 = vpop.f32.mrb[18].mxu0  ;;  %v378_v11 = vadd.f32 %v1785_v17, %v1738_v37 }
 0x174   :  { %v1261_v22 = vpop.eup %1260  ;;  %1280 = vpow2.f32 %v1041_v20  ;;  %v1799_v39 = vadd.f32 %v383_v33, %v1738_v37  ;;  %v385_v41 = vpop.f32.mrb[19].mxu0 }
 0x175   :  { %v1803_v43 = vpop.eup %1262  ;;  %1282 = vrcp.f32 %v733_v30  ;;  %986 = vst [vmem:[#allocation9 + $0x8] sm:$0xff] %v922_v31  ;;  %v1806_v44 = vadd.f32 %v385_v41, %v1740_v38  ;;  %v544_v61 = vpop.f32.mrb[18].mxu1  ;;  %v891_v15 = vmul.f32 %v1261_v22, %v99_v24  ;;  %v1043_v22 = vmul.f32 -1.442695, %v378_v11 }
 0x176   :  { %v1265_v47 = vpop.eup %1264  ;;  %1284 = vtanh.f32 %v922_v31  ;;  %v1824_v1 = vadd.f32 %v544_v61, %v1744_v45  ;;  %v546_v35 = vpop.f32.mrb[19].mxu1 }
 0x177   :  { %v1813_v51 = vpop.eup %1266  ;;  %v638_v52 = vadd.f32 1.0, %v1265_v47  ;;  %1286 = vpow2.f32 %v1057_v32  ;;  %v389_v55 = vpop.f32.mrb[20].mxu0  ;;  %v1827_v6 = vadd.f32 %v546_v35, %v1746_v49  ;;  %v100_v47 = vld [vmem:[#allocation5 + $0x18] sm:$0xff] }
 0x178   :  { %v1269_v57 = vpop.eup %1268  ;;  %1288 = vpow2.f32 %v1070_v34  ;;  %v1818_v59 = vadd.f32 %v389_v55, %v1738_v37  ;;  %v391_v60 = vpop.f32.mrb[21].mxu0  ;;  %v521_v34 = vadd.f32 %v1773_v53, %v1744_v45 }
 0x179   :  { %v1271_v62 = vpop.eup %1270  ;;  %1290 = vrcp.f32 %v638_v52  ;;  %v734_v63 = vadd.f32 1.0, %v1269_v57  ;;  %v1821_v0 = vadd.f32 %v391_v60, %v1740_v38  ;;  %v550_v20 = vpop.f32.mrb[20].mxu1 }
 0x17a   :  { %v1273_v2 = vpop.eup %1272  ;;  %v827_v3 = vadd.f32 1.0, %v1271_v62  ;;  %1292 = vtanh.f32 %v511_v48  ;;  %v1842_v40 = vadd.f32 %v550_v20, %v1744_v45  ;;  %v552_v17 = vpop.f32.mrb[21].mxu1  ;;  %v1072_v35 = vmul.f32 -1.442695, %v521_v34 }
 0x17b   :  { %v1275_v8 = vpop.eup %1274  ;;  %1294 = vrcp.f32 %v734_v63  ;;  %v395_v13 = vpop.f32.mrb[22].mxu0  ;;  %v1848_v31 = vadd.f32 %v552_v17, %v1746_v49  ;;  %v892_v63 = vmul.f32 %v1273_v2, %v100_v47 }
 0x17c   :  { %v1833_v14 = vpop.eup %1276  ;;  %v953_v16 = vmul.f32 %v1275_v8, %v1255_v12  ;;  %1296 = vrcp.f32 %v827_v3  ;;  %v1836_v18 = vadd.f32 %v395_v13, %v1738_v37  ;;  %v397_v19 = vpop.f32.mrb[23].mxu0  ;;  %v380_v12 = vadd.f32 %v1789_v23, %v1740_v38 }
 0x17d   :  { %v1279_v21 = vpop.eup %1278  ;;  %1298 = vpow2.f32 %v1042_v58  ;;  %v1839_v26 = vadd.f32 %v397_v19, %v1740_v38  ;;  %v556_v23 = vpop.f32.mrb[22].mxu1  ;;  %v523_v8 = vadd.f32 %v1775_v56, %v1746_v49 }
 0x17e   :  { %v1281_v28 = vpop.eup %1280  ;;  %969 = vst [vmem:[#allocation8] sm:$0xff] %v953_v16  ;;  %v907_v30 = vmul.f32 %v1279_v21, %v1795_v29  ;;  %1300 = vpow2.f32 %v1058_v5  ;;  %v1860_v57 = vadd.f32 %v556_v23, %v1744_v45  ;;  %v558_v53 = vpop.f32.mrb[23].mxu1  ;;  %v1059_v61 = vmul.f32 -1.442695, %v380_v12 }
 0x17f   :  { %v1283_v32 = vpop.eup %1282  ;;  %v639_v33 = vadd.f32 1.0, %v1281_v28  ;;  %1302 = vpow2.f32 %v1071_v9  ;;  %v401_v36 = vpop.f32.mrb[24].mxu0  ;;  %v1863_v62 = vadd.f32 %v558_v53, %v1746_v49 }
 0x180   :  { %v1285_v41 = vpop.eup %1284  ;;  %v923_v48 = vadd.f32 %v907_v30, %v891_v15  ;;  %1304 = vtanh.f32 %v517_v10  ;;  %v1853_v29 = vadd.f32 %v401_v36, %v1738_v37  ;;  %v403_v50 = vpop.f32.mrb[25].mxu0  ;;  %v101_v15 = vld [vmem:[#allocation5 + $0x20] sm:$0xff]  ;;  %v1044_v30 = vmul.f32 -1.442695, %v1799_v39 }
 0x181   :  { %v1287_v52 = vpop.eup %1286  ;;  %v954_v54 = vmul.f32 %v1285_v41, %v1803_v43  ;;  %1306 = vrcp.f32 %v639_v33  ;;  %v1857_v55 = vadd.f32 %v403_v50, %v1740_v38  ;;  %v562_v11 = vpop.f32.mrb[24].mxu1 }
 0x182   :  { %v1289_v58 = vpop.eup %1288  ;;  %1308 = vtanh.f32 %v923_v48  ;;  %987 = vst [vmem:[#allocation9 + $0x10] sm:$0xff] %v923_v48  ;;  %v735_v60 = vadd.f32 1.0, %v1287_v52  ;;  %v1879_v19 = vadd.f32 %v562_v11, %v1744_v45  ;;  %v564_v20 = vpop.f32.mrb[25].mxu1 }
 0x183   :  { %v1865_v24 = vpop.eup %1290  ;;  %970 = vst [vmem:[#allocation8 + $0x8] sm:$0xff] %v954_v54  ;;  %v828_v43 = vadd.f32 1.0, %v1289_v58  ;;  %1310 = vpow2.f32 %v1043_v22  ;;  %v407_v3 = vpop.f32.mrb[26].mxu0  ;;  %v1882_v56 = vadd.f32 %v564_v20, %v1746_v49  ;;  %v893_v22 = vmul.f32 %v1283_v32, %v101_v15  ;;  %v102_v20 = vld [vmem:[#allocation5 + $0x28] sm:$0xff] }
 0x184   :  { %v1293_v5 = vpop.eup %1292  ;;  %1312 = vrcp.f32 %v735_v60  ;;  %v1870_v9 = vadd.f32 %v407_v3, %v1738_v37  ;;  %v409_v10 = vpop.f32.mrb[27].mxu0  ;;  %v1060_v54 = vmul.f32 -1.442695, %v1806_v44 }
 0x185   :  { %v1872_v13 = vpop.eup %1294  ;;  %1314 = vrcp.f32 %v828_v43  ;;  %v908_v2 = vmul.f32 %v1293_v5, %v1813_v51  ;;  %v1876_v16 = vadd.f32 %v409_v10, %v1740_v38  ;;  %v527_v51 = vadd.f32 %v1778_v4, %v1744_v45  ;;  %v568_v47 = vpop.f32.mrb[26].mxu1 }
 0x186   :  { %v1297_v21 = vpop.eup %1296  ;;  %1316 = vpow2.f32 %v1059_v61  ;;  %v1894_v39 = vadd.f32 %v568_v47, %v1744_v45  ;;  %v570_v4 = vpop.f32.mrb[27].mxu1 }
 0x187   :  { %v1299_v17 = vpop.eup %1298  ;;  %v924_v28 = vadd.f32 %v908_v2, %v892_v63  ;;  %1318 = vpow2.f32 %v1072_v35  ;;  %v413_v12 = vpop.f32.mrb[28].mxu0  ;;  %v1898_v53 = vadd.f32 %v570_v4, %v1746_v49  ;;  %v1073_v43 = vmul.f32 -1.442695, %v527_v51 }
 0x188   :  { %v1301_v33 = vpop.eup %1300  ;;  %v640_v34 = vadd.f32 1.0, %v1299_v17  ;;  %1320 = vtanh.f32 %v523_v8  ;;  %v1888_v36 = vadd.f32 %v413_v12, %v1738_v37  ;;  %v415_v41 = vpop.f32.mrb[29].mxu0  ;;  %v529_v17 = vadd.f32 %v1780_v7, %v1746_v49 }
 0x189   :  { %v1303_v48 = vpop.eup %1302  ;;  %1322 = vtanh.f32 %v924_v28  ;;  %988 = vst [vmem:[#allocation9 + $0x18] sm:$0xff] %v924_v28  ;;  %v736_v50 = vadd.f32 1.0, %v1301_v33  ;;  %v1891_v23 = vadd.f32 %v415_v41, %v1740_v38  ;;  %v574_v5 = vpop.f32.mrb[28].mxu1  ;;  %v533_v51 = vadd.f32 %v1791_v25, %v1744_v45 }
 0x18a   :  { %v1305_v52 = vpop.eup %1304  ;;  %1324 = vrcp.f32 %v640_v34  ;;  %v829_v32 = vadd.f32 1.0, %v1303_v48  ;;  %v576_v15 = vpop.f32.mrb[29].mxu1  ;;  %v894_v7 = vmul.f32 %v1872_v13, %v102_v20 }
 0x18b   :  { %v1900_v58 = vpop.eup %1306  ;;  %1326 = vrcp.f32 %v736_v50  ;;  %v909_v60 = vmul.f32 %v1305_v52, %v1833_v14  ;;  %v419_v61 = vpop.f32.mrb[30].mxu0  ;;  %v1061_v50 = vmul.f32 -1.442695, %v1821_v0 }
 0x18c   :  { %v1309_v63 = vpop.eup %1308  ;;  %1328 = vrcp.f32 %v829_v32  ;;  %v1904_v35 = vadd.f32 %v419_v61, %v1738_v37  ;;  %v421_v3 = vpop.f32.mrb[31].mxu0  ;;  %v1912_v37 = vadd.f32 %v574_v5, %v1744_v45  ;;  %v1074_v32 = vmul.f32 -1.442695, %v533_v51 }
 0x18d   :  { %v1311_v8 = vpop.eup %1310  ;;  %v955_v10 = vmul.f32 %v1309_v63, %v1297_v21  ;;  %v925_v44 = vadd.f32 %v909_v60, %v893_v22  ;;  %1330 = vpow2.f32 %v1044_v30  ;;  %v1907_v11 = vadd.f32 %v421_v3, %v1740_v38  ;;  %v580_v12 = vpop.f32.mrb[30].mxu1  ;;  %v103_v3 = vld [vmem:[#allocation5 + $0x30] sm:$0xff] }
 0x18e   :  { %v1313_v2 = vpop.eup %1312  ;;  %v641_v14 = vadd.f32 1.0, %v1311_v8  ;;  %1332 = vpow2.f32 %v1060_v54  ;;  %v1915_v21 = vadd.f32 %v576_v15, %v1746_v49  ;;  %v1045_v30 = vmul.f32 -1.442695, %v1818_v59  ;;  %v582_v41 = vpop.f32.mrb[31].mxu1 }
 0x18f   :  { %v1315_v28 = vpop.eup %1314  ;;  %971 = vst [vmem:[#allocation8 + $0x10] sm:$0xff] %v955_v10  ;;  %1334 = vtanh.f32 %v925_v44  ;;  %989 = vst [vmem:[#allocation9 + $0x20] sm:$0xff] %v925_v44  ;;  %v1922_v34 = vadd.f32 %v580_v12, %v1744_v45  ;;  %v1926_v59 = vadd.f32 %v582_v41, %v1746_v49  ;;  %v535_v61 = vadd.f32 %v1793_v27, %v1746_v49  ;;  %v104_v12 = vld [vmem:[#allocation5 + $0x38] sm:$0xff] }
 0x190   :  { %v1317_v38 = vpop.eup %1316  ;;  %1336 = vrcp.f32 %v641_v14  ;;  %v1046_v8 = vmul.f32 -1.442695, %v1836_v18  ;;  %v1062_v27 = vmul.f32 -1.442695, %v1839_v26  ;;  %v541_v18 = vadd.f32 %v1808_v46, %v1746_v49 }
 0x191   :  { %v1319_v33 = vpop.eup %1318  ;;  %v737_v22 = vadd.f32 1.0, %v1317_v38  ;;  %1338 = vpow2.f32 %v1073_v43 }
 0x192   :  { %v1321_v47 = vpop.eup %1320  ;;  %v830_v48 = vadd.f32 1.0, %v1319_v33  ;;  %1340 = vtanh.f32 %v529_v17  ;;  %v895_v17 = vmul.f32 %v1313_v2, %v103_v3  ;;  %v1048_v3 = vmul.f32 -1.442695, %v1870_v9 }
 0x193   :  { %v1323_v4 = vpop.eup %1322  ;;  %1342 = vrcp.f32 %v737_v22  ;;  %v910_v25 = vmul.f32 %v1321_v47, %v1865_v24  ;;  %v539_v24 = vadd.f32 %v1801_v42, %v1744_v45  ;;  %v1047_v22 = vmul.f32 -1.442695, %v1853_v29 }
 0x194   :  { %v1929_v52 = vpop.eup %1324  ;;  %v956_v13 = vmul.f32 %v1323_v4, %v1315_v28  ;;  %1344 = vrcp.f32 %v830_v48 }
 0x195   :  { %v1327_v54 = vpop.eup %1326  ;;  %v926_v60 = vadd.f32 %v910_v25, %v894_v7  ;;  %1346 = vpow2.f32 %v1045_v30  ;;  %v1075_v28 = vmul.f32 -1.442695, %v539_v24  ;;  %v1076_v25 = vmul.f32 -1.442695, %v1824_v1 }
 0x196   :  { %v1329_v63 = vpop.eup %1328  ;;  %972 = vst [vmem:[#allocation8 + $0x18] sm:$0xff] %v956_v13  ;;  %1348 = vpow2.f32 %v1061_v50  ;;  %v896_v46 = vmul.f32 %v1327_v54, %v104_v12 }
 0x197   :  { %v1331_v0 = vpop.eup %1330  ;;  %1350 = vtanh.f32 %v926_v60  ;;  %990 = vst [vmem:[#allocation9 + $0x28] sm:$0xff] %v926_v60 }
 0x198   :  { %v1333_v43 = vpop.eup %1332  ;;  %v642_v5 = vadd.f32 1.0, %v1331_v0  ;;  %1352 = vpow2.f32 %v1074_v32 }
 0x199   :  { %v1335_v10 = vpop.eup %1334  ;;  %v738_v44 = vadd.f32 1.0, %v1333_v43  ;;  %1354 = vtanh.f32 %v535_v61  ;;  %v105_v61 = vld [vmem:[#allocation5 + $0x40] sm:$0xff] }
 0x19a   :  { %v1937_v15 = vpop.eup %1336  ;;  %v957_v20 = vmul.f32 %v1335_v10, %v1329_v63  ;;  %1356 = vrcp.f32 %v642_v5 }
 0x19b   :  { %v1339_v14 = vpop.eup %1338  ;;  %1358 = vrcp.f32 %v738_v44 }
 0x19c   :  { %v1341_v45 = vpop.eup %1340  ;;  %973 = vst [vmem:[#allocation8 + $0x20] sm:$0xff] %v957_v20  ;;  %v831_v42 = vadd.f32 1.0, %v1339_v14  ;;  %1360 = vpow2.f32 %v1046_v8  ;;  %v1064_v8 = vmul.f32 -1.442695, %v1876_v16  ;;  %v1077_v14 = vmul.f32 -1.442695, %v1842_v40 }
 0x19d   :  { %v1343_v38 = vpop.eup %1342  ;;  %v911_v30 = vmul.f32 %v1341_v45, %v1900_v58  ;;  %1362 = vpow2.f32 %v1062_v27  ;;  %v1063_v58 = vmul.f32 -1.442695, %v1857_v55 }
 0x19e   :  { %v1345_v26 = vpop.eup %1344  ;;  %1364 = vrcp.f32 %v831_v42  ;;  %v897_v43 = vmul.f32 %v1343_v38, %v105_v61  ;;  %v1049_v38 = vmul.f32 -1.442695, %v1888_v36 }
 0x19f   :  { %v1347_v51 = vpop.eup %1346  ;;  %v927_v33 = vadd.f32 %v911_v30, %v895_v17  ;;  %1366 = vpow2.f32 %v1075_v28 }
 0x1a0   :  { %v1349_v2 = vpop.eup %1348  ;;  %v643_v7 = vadd.f32 1.0, %v1347_v51  ;;  %1368 = vtanh.f32 %v541_v18 }
 0x1a1   :  { %v1351_v41 = vpop.eup %1350  ;;  %1370 = vtanh.f32 %v927_v33  ;;  %991 = vst [vmem:[#allocation9 + $0x30] sm:$0xff] %v927_v33  ;;  %v739_v47 = vadd.f32 1.0, %v1349_v2  ;;  %v1078_v33 = vmul.f32 -1.442695, %v1860_v57 }
 0x1a2   :  { %v1353_v49 = vpop.eup %1352  ;;  %v958_v48 = vmul.f32 %v1351_v41, %v1345_v26  ;;  %1372 = vrcp.f32 %v643_v7  ;;  %v1065_v26 = vmul.f32 -1.442695, %v1891_v23  ;;  %v1050_v41 = vmul.f32 -1.442695, %v1904_v35 }
 0x1a3   :  { %v1355_v50 = vpop.eup %1354  ;;  %1374 = vrcp.f32 %v739_v47  ;;  %v832_v4 = vadd.f32 1.0, %v1353_v49  ;;  %v107_v49 = vld [vmem:[#allocation5 + $0x50] sm:$0xff]  ;;  %v1066_v35 = vmul.f32 -1.442695, %v1907_v11 }
 0x1a4   :  { %v1945_v13 = vpop.eup %1356  ;;  %974 = vst [vmem:[#allocation8 + $0x28] sm:$0xff] %v958_v48  ;;  %v912_v29 = vmul.f32 %v1355_v50, %v1929_v52  ;;  %1376 = vpow2.f32 %v1047_v22 }
 0x1a5   :  { %v1359_v32 = vpop.eup %1358  ;;  %1378 = vrcp.f32 %v832_v4 }
 0x1a6   :  { %v1361_v60 = vpop.eup %1360  ;;  %v928_v54 = vadd.f32 %v912_v29, %v896_v46  ;;  %1380 = vpow2.f32 %v1063_v58 }
 0x1a7   :  { %v1363_v63 = vpop.eup %1362  ;;  %v644_v0 = vadd.f32 1.0, %v1361_v60  ;;  %1382 = vpow2.f32 %v1076_v25 }
 0x1a8   :  { %v1365_v55 = vpop.eup %1364  ;;  %1384 = vtanh.f32 %v928_v54  ;;  %992 = vst [vmem:[#allocation9 + $0x38] sm:$0xff] %v928_v54  ;;  %v740_v24 = vadd.f32 1.0, %v1363_v63  ;;  %v108_v63 = vld [vmem:[#allocation5 + $0x58] sm:$0xff] }
 0x1a9   :  { %v1367_v1 = vpop.eup %1366  ;;  %1386 = vrcp.f32 %v644_v0 }
 0x1aa   :  { %v1369_v52 = vpop.eup %1368  ;;  %1388 = vrcp.f32 %v740_v24  ;;  %v833_v5 = vadd.f32 1.0, %v1367_v1 }
 0x1ab   :  { %v1371_v10 = vpop.eup %1370  ;;  %v913_v44 = vmul.f32 %v1369_v52, %v1937_v15  ;;  %1390 = vtanh.f32 %v1827_v6  ;;  %v106_v6 = vld [vmem:[#allocation5 + $0x48] sm:$0xff] }
 0x1ac   :  { %v1952_v27 = vpop.eup %1372  ;;  %v959_v20 = vmul.f32 %v1371_v10, %v1365_v55  ;;  %1392 = vrcp.f32 %v833_v5  ;;  %v898_v7 = vmul.f32 %v1359_v32, %v106_v6  ;;  %v1079_v32 = vmul.f32 -1.442695, %v1879_v19 }
 0x1ad   :  { %v1375_v17 = vpop.eup %1374  ;;  %v929_v28 = vadd.f32 %v913_v44, %v897_v43  ;;  %1394 = vpow2.f32 %v1048_v3  ;;  %v1080_v3 = vmul.f32 -1.442695, %v1894_v39  ;;  %v1082_v6 = vmul.f32 -1.442695, %v1922_v34 }
 0x1ae   :  { %v1377_v9 = vpop.eup %1376  ;;  %975 = vst [vmem:[#allocation8 + $0x30] sm:$0xff] %v959_v20  ;;  %1396 = vpow2.f32 %v1064_v8 }
 0x1af   :  { %v1379_v45 = vpop.eup %1378  ;;  %1398 = vtanh.f32 %v929_v28  ;;  %993 = vst [vmem:[#allocation9 + $0x40] sm:$0xff] %v929_v28  ;;  %v645_v16 = vadd.f32 1.0, %v1377_v9  ;;  %v109_v9 = vld [vmem:[#allocation5 + $0x60] sm:$0xff] }
 0x1b0   :  { %v1381_v42 = vpop.eup %1380  ;;  %1400 = vpow2.f32 %v1077_v14 }
 0x1b1   :  { %v1383_v15 = vpop.eup %1382  ;;  %1402 = vrcp.f32 %v645_v16  ;;  %v741_v18 = vadd.f32 1.0, %v1381_v42 }
 0x1b2   :  { %v1385_v30 = vpop.eup %1384  ;;  %v834_v40 = vadd.f32 1.0, %v1383_v15  ;;  %1404 = vtanh.f32 %v1848_v31 }
 0x1b3   :  { %v1387_v51 = vpop.eup %1386  ;;  %v960_v12 = vmul.f32 %v1385_v30, %v1379_v45  ;;  %1406 = vrcp.f32 %v741_v18 }
 0x1b4   :  { %v1389_v2 = vpop.eup %1388  ;;  %1408 = vrcp.f32 %v834_v40 }
 0x1b5   :  { %v1391_v22 = vpop.eup %1390  ;;  %976 = vst [vmem:[#allocation8 + $0x38] sm:$0xff] %v960_v12  ;;  %1410 = vpow2.f32 %v1049_v38  ;;  %v900_v43 = vmul.f32 %v1389_v2, %v108_v63 }
 0x1b6   :  { %v1393_v36 = vpop.eup %1392  ;;  %v914_v47 = vmul.f32 %v1391_v22, %v1945_v13  ;;  %1412 = vpow2.f32 %v1065_v26  ;;  %v899_v13 = vmul.f32 %v1375_v17, %v107_v49 }
 0x1b7   :  { %v1395_v31 = vpop.eup %1394  ;;  %1414 = vpow2.f32 %v1078_v33  ;;  %v110_v33 = vld [vmem:[#allocation5 + $0x68] sm:$0xff] }
 0x1b8   :  { %v1397_v23 = vpop.eup %1396  ;;  %v930_v46 = vadd.f32 %v914_v47, %v898_v7  ;;  %v646_v48 = vadd.f32 1.0, %v1395_v31  ;;  %1416 = vtanh.f32 %v1863_v62  ;;  %v111_v7 = vld [vmem:[#allocation5 + $0x70] sm:$0xff] }
 0x1b9   :  { %v1399_v57 = vpop.eup %1398  ;;  %v742_v58 = vadd.f32 1.0, %v1397_v23  ;;  %1418 = vpow2.f32 %v1050_v41 }
 0x1ba   :  { %v1401_v50 = vpop.eup %1400  ;;  %v961_v4 = vmul.f32 %v1399_v57, %v1393_v36  ;;  %1420 = vtanh.f32 %v930_v46  ;;  %994 = vst [vmem:[#allocation9 + $0x48] sm:$0xff] %v930_v46 }
 0x1bb   :  { %v1403_v25 = vpop.eup %1402  ;;  %1422 = vrcp.f32 %v646_v48  ;;  %v835_v29 = vadd.f32 1.0, %v1401_v50  ;;  %v112_v48 = vld [vmem:[#allocation5 + $0x78] sm:$0xff] }
 0x1bc   :  { %v1405_v60 = vpop.eup %1404  ;;  %977 = vst [vmem:[#allocation8 + $0x40] sm:$0xff] %v961_v4  ;;  %1424 = vrcp.f32 %v742_v58 }
 0x1bd   :  { %v1407_v61 = vpop.eup %1406  ;;  %1426 = vrcp.f32 %v835_v29  ;;  %v915_v62 = vmul.f32 %v1405_v60, %v1952_v27 }
 0x1be   :  { %v1409_v54 = vpop.eup %1408  ;;  %1428 = vpow2.f32 %v1066_v35  ;;  %v901_v42 = vmul.f32 %v1407_v61, %v109_v9 }
 0x1bf   :  { %v1411_v0 = vpop.eup %1410  ;;  %v931_v55 = vadd.f32 %v915_v62, %v899_v13  ;;  %1430 = vpow2.f32 %v1079_v32 }
 0x1c0   :  { %v1413_v11 = vpop.eup %1412  ;;  %v647_v24 = vadd.f32 1.0, %v1411_v0  ;;  %1432 = vtanh.f32 %v1882_v56  ;;  %v1081_v56 = vmul.f32 -1.442695, %v1912_v37 }
 0x1c1   :  { %v1415_v1 = vpop.eup %1414  ;;  %1434 = vtanh.f32 %v931_v55  ;;  %995 = vst [vmem:[#allocation9 + $0x50] sm:$0xff] %v931_v55  ;;  %v743_v19 = vadd.f32 1.0, %v1413_v11 }
 0x1c2   :  { %v1417_v52 = vpop.eup %1416  ;;  %1436 = vrcp.f32 %v647_v24  ;;  %v836_v5 = vadd.f32 1.0, %v1415_v1 }
 0x1c3   :  { %v1419_v8 = vpop.eup %1418  ;;  %1438 = vrcp.f32 %v743_v19  ;;  %v916_v10 = vmul.f32 %v1417_v52, %v1387_v51 }
 0x1c4   :  { %v1421_v44 = vpop.eup %1420  ;;  %1440 = vrcp.f32 %v836_v5  ;;  %v648_v27 = vadd.f32 1.0, %v1419_v8 }
 0x1c5   :  { %v1423_v20 = vpop.eup %1422  ;;  %v962_v14 = vmul.f32 %v1421_v44, %v1409_v54  ;;  %v932_v17 = vadd.f32 %v916_v10, %v900_v43  ;;  %1442 = vpow2.f32 %v1080_v3 }
 0x1c6   :  { %v1425_v28 = vpop.eup %1424  ;;  %1444 = vrcp.f32 %v648_v27 }
 0x1c7   :  { %v1427_v45 = vpop.eup %1426  ;;  %978 = vst [vmem:[#allocation8 + $0x48] sm:$0xff] %v962_v14  ;;  %1446 = vtanh.f32 %v932_v17  ;;  %996 = vst [vmem:[#allocation9 + $0x58] sm:$0xff] %v932_v17  ;;  %v902_v22 = vmul.f32 %v1425_v28, %v110_v33 }
 0x1c8   :  { %v1429_v39 = vpop.eup %1428  ;;  %1448 = vtanh.f32 %v1898_v53 }
 0x1c9   :  { %v1431_v16 = vpop.eup %1430  ;;  %v744_v15 = vadd.f32 1.0, %v1429_v39  ;;  %1450 = vpow2.f32 %v1081_v56 }
 0x1ca   :  { %v1433_v18 = vpop.eup %1432  ;;  %v837_v38 = vadd.f32 1.0, %v1431_v16  ;;  %1452 = vtanh.f32 %v1915_v21 }
 0x1cb   :  { %v1435_v37 = vpop.eup %1434  ;;  %1454 = vrcp.f32 %v744_v15  ;;  %v917_v30 = vmul.f32 %v1433_v18, %v1403_v25 }
 0x1cc   :  { %v1437_v40 = vpop.eup %1436  ;;  %v963_v26 = vmul.f32 %v1435_v37, %v1427_v45  ;;  %1456 = vrcp.f32 %v837_v38 }
 0x1cd   :  { %v1439_v51 = vpop.eup %1438  ;;  %v933_v12 = vadd.f32 %v917_v30, %v901_v42  ;;  %1458 = vpow2.f32 %v1082_v6 }
 0x1ce   :  { %v1441_v53 = vpop.eup %1440  ;;  %979 = vst [vmem:[#allocation8 + $0x50] sm:$0xff] %v963_v26  ;;  %1460 = vtanh.f32 %v1926_v59  ;;  %v903_v23 = vmul.f32 %v1439_v51, %v111_v7 }
 0x1cf   :  { %v1443_v2 = vpop.eup %1442  ;;  %1462 = vtanh.f32 %v933_v12  ;;  %997 = vst [vmem:[#allocation9 + $0x60] sm:$0xff] %v933_v12 }
 0x1d0   :  { %v1445_v34 = vpop.eup %1444  ;;  %v838_v41 = vadd.f32 1.0, %v1443_v2 }
 0x1d1   :  { %v1447_v21 = vpop.eup %1446 }
 0x1d2   :  { %v1449_v36 = vpop.eup %1448  ;;  %v964_v47 = vmul.f32 %v1447_v21, %v1441_v53  ;;  %1464 = vrcp.f32 %v838_v41 }
 0x1d3   :  { %v1451_v31 = vpop.eup %1450  ;;  %v918_v49 = vmul.f32 %v1449_v36, %v1423_v20 }
 0x1d4   :  { %v1453_v46 = vpop.eup %1452  ;;  %980 = vst [vmem:[#allocation8 + $0x58] sm:$0xff] %v964_v47  ;;  %v839_v57 = vadd.f32 1.0, %v1451_v31 }
 0x1d5   :  { %v1455_v58 = vpop.eup %1454  ;;  %v934_v59 = vadd.f32 %v918_v49, %v902_v22  ;;  %v919_v50 = vmul.f32 %v1453_v46, %v1437_v40 }
 0x1d6   :  { %v1457_v4 = vpop.eup %1456  ;;  %1466 = vrcp.f32 %v839_v57  ;;  %v904_v25 = vmul.f32 %v1455_v58, %v112_v48 }
 0x1d7   :  { %v1459_v35 = vpop.eup %1458  ;;  %1468 = vtanh.f32 %v934_v59  ;;  %998 = vst [vmem:[#allocation9 + $0x68] sm:$0xff] %v934_v59  ;;  %v935_v13 = vadd.f32 %v919_v50, %v903_v23 }
 0x1d8   :  { %v1461_v29 = vpop.eup %1460  ;;  %v840_v32 = vadd.f32 1.0, %v1459_v35 }
 0x1d9   :  { %v1463_v60 = vpop.eup %1462  ;;  %1470 = vtanh.f32 %v935_v13  ;;  %999 = vst [vmem:[#allocation9 + $0x70] sm:$0xff] %v935_v13  ;;  %v920_v61 = vmul.f32 %v1461_v29, %v1445_v34 }
 0x1da   :  { %v965_v62 = vmul.f32 %v1463_v60, %v1457_v4  ;;  %1472 = vrcp.f32 %v840_v32 }
 0x1db   :  { %v936_v54 = vadd.f32 %v920_v61, %v904_v25 }
 0x1dc   :  { %981 = vst [vmem:[#allocation8 + $0x60] sm:$0xff] %v965_v62 }
 0x1dd   :  { %1474 = vtanh.f32 %v936_v54  ;;  %1000 = vst [vmem:[#allocation9 + $0x78] sm:$0xff] %v936_v54 }
 0x1de   :  { %1553 = shalt.err (!%p1550_p0)
}
 0x1df   :  { %s1554_s23 = scalar_lea.hbm %s2008_s6, 2048 }
 0x1e0   :  { %p1555_p1 = scmp.ne.s32.totalorder %s2008_s6, %s1554_s23  ;;  %p1558_p2 = scmp.lt.u32.totalorder %s1554_s23, %s2008_s6 }
 0x1e2   :  { %p1560_p3 = pnand %p1558_p2, %p1555_p1 }
 0x1e4   :  { %1563 = shalt.err (!%p1560_p3)
}
 0x1e5   :  { %1024 = dma.vmem_to_hbm [thread:$0]  %s1019_s4, 2048, %s2008_s6, [#allocation10], %s1596_s9, %s1596_s9, %s1597_s10   ;;  %v1465_v63 = vpop.eup %1464 }
 0x1e6   :  { %v1467_v0 = vpop.eup %1466  ;;  %s1602_s7 = smov [#allocation8]  }
 0x1e7   :  { %v1469_v55 = vpop.eup %1468  ;;  %s1006_s8 = sshll.u32 %s1602_s7, 4  ;;  %s1007_s8 = int_to_ptr.vmem [resolvable:$true] %s1006_s8 }
 0x1e8   :  { %v966_v11 = vmul.f32 %v1469_v55, %v1465_v63  ;;  %v1471_v24 = vpop.eup %1470  ;;  %s1564_s1 = scalar_lea.vmem %s1007_s8, 2048  ;;  %p1569_p5 = scmp.lt.s32.totalorder %s1007_s8, %s1007_s8 }
 0x1e9   :  { %v967_v1 = vmul.f32 %v1471_v24, %v1467_v0  ;;  %v1473_v43 = vpop.eup %1472  ;;  %p1565_p4 = scmp.ne.s32.totalorder %s1007_s8, %s1564_s1  ;;  %p1570_p6 = scmp.lt.s32.totalorder %s1564_s1, %s1564_s1 }
 0x1ea   :  { %982 = vst [vmem:[#allocation8 + $0x68] sm:$0xff] %v966_v11  ;;  %v1475_v19 = vpop.eup %1474 }
 0x1eb   :  { %983 = vst [vmem:[#allocation8 + $0x70] sm:$0xff] %v967_v1  ;;  %v968_v3 = vmul.f32 %v1475_v19, %v1473_v43  ;;  %p1571_p7 = por %p1570_p6, %p1569_p5 }
 0x1ed   :  { %984 = vst [vmem:[#allocation8 + $0x78] sm:$0xff] %v968_v3  ;;  %p1572_p8 = pnand %p1571_p7, %p1565_p4 }
 0x1ef   :  { %1575 = shalt.err (!%p1572_p8)
}
 0x1f0   :  { %s1576_s11 = scalar_lea.hbm %s2007_s5, 2048 }
 0x1f1   :  { %p1577_p9 = scmp.ne.s32.totalorder %s2007_s5, %s1576_s11  ;;  %p1580_p10 = scmp.lt.u32.totalorder %s1576_s11, %s2007_s5 }
 0x1f3   :  { %p1582_p11 = pnand %p1580_p10, %p1577_p9 }
 0x1f5   :  { %1585 = shalt.err (!%p1582_p11)
}
 0x1f6   :  { %1012 = dma.vmem_to_hbm [thread:$0]  %s1007_s8, 2048, %s2007_s5, [#allocation4], %s1596_s9, %s1596_s9, %s1597_s10  }
 0x1f7   :  { %1590 = dma.done.wait [#allocation4], 2048  }
 0x1f8   :  { %1591 = vsyncadd [#allocation4], 4294965248 }
 0x1f9   :  { %1592 = dma.done.wait [#allocation10], 2048  }
 0x1fa   :  { %1593 = vsyncadd [#allocation10], 4294965248 }
 0x1fb   :  { %1031 = vsyncpa [#allocation3], 1 }
 0x1fc   :  { %1032 = vsyncpa [#allocation6], 1 }
 0x1fd   :  { %1033 = vsyncpa [#allocation4], 1 }
 0x1fe   :  { %1034 = vsyncpa [#allocation10], 1 }

</bundles_post_ra>
